<compile_context>
chip_gen: v6e
topology: v6e:2x2x1
jax: 0.10.0
libtpu: 0.0.40
codegen_flags: <defaults>
</compile_context>

<pallas_src>
import jax
import jax.numpy as jnp
import numpy as np
from jax.experimental import pallas as pl
from jax.experimental.pallas import tpu as pltpu

GROUPS_IN_NORMALIZATION = 32
EPS = 1e-5  # PyTorch GroupNorm default eps


# ----------------------------------------------------------------------------
# In-kernel GroupNorm + ReLU on a (P, C') fp32 tile.
#   gmat : (C', G) one-hot channel->group matrix,  gmat_t : (G, C')
# PyTorch GroupNorm: biased variance over (channels_in_group x spatial).
# The group reduce and the group->channel expansion are each one tiny matmul
# (mean & var / mean & rstd stacked, M=2); scale/shift are folded so the
# per-element work is a single fused multiply-add + max.
# ----------------------------------------------------------------------------
def _gn_relu(y, gamma, beta, gmat, gmat_t):
    P, C = y.shape
    G = gmat.shape[1]
    cnt = jnp.float32(P * (C // G))
    s1 = jnp.sum(y, axis=0, keepdims=True)                      # (1, C')
    s2 = jnp.sum(y * y, axis=0, keepdims=True)                  # (1, C')
    sg = jnp.dot(jnp.concatenate([s1, s2], axis=0), gmat,
                 preferred_element_type=jnp.float32)            # (2, G)
    mean_g = sg[0:1] / cnt
    var_g = jnp.maximum(sg[1:2] / cnt - mean_g * mean_g, 0.0)
    rstd_g = jax.lax.rsqrt(var_g + EPS)
    st = jnp.dot(jnp.concatenate([mean_g, rstd_g], axis=0), gmat_t,
                 preferred_element_type=jnp.float32)            # (2, C')
    scale = gamma * st[1:2]
    shift = beta - st[0:1] * scale
    return jnp.maximum(y * scale + shift, 0.0)


# ----------------------------------------------------------------------------
# Fused DecoderBlock kernel: one batch sample per grid step.
#   x_ref  : (P, Cin)              fp32 activations (P = H*W)
#   sh_ref : (3, P, P)             bf16 0/1 shift matrices [col+1, row+1, both]
#   w1     : (Cin, C)  bf16        w2p : (4C, 4C) bf16 packed phase weight
#   w3     : (4C, 4*C3) bf16 block-diag
#   vecK   : (3, C') fp32 rows = [bias, gamma, beta]
#   gmatK / gmatK_t : one-hot group matrices
#   o_ref  : (P, 4*C3) fp32, phase-major last dim = (pr, pc, c_out)
# ----------------------------------------------------------------------------
def _decoder_block_kernel(x_ref, sh_ref,
                          w1_ref, v1_ref, g1_ref, g1t_ref,
                          w2_ref, v2_ref, g2_ref, g2t_ref,
                          w3_ref, v3_ref, g3_ref, g3t_ref,
                          o_ref):
    f32 = jnp.float32
    bf16 = jnp.bfloat16

    # ---- stage 1: 1x1 conv (pointwise matmul) + GroupNorm + ReLU -----------
    xb = x_ref[...].astype(bf16)                                 # (P, Cin)
    y1 = jnp.dot(xb, w1_ref[...], preferred_element_type=f32) + v1_ref[0:1]
    y1 = _gn_relu(y1, v1_ref[1:2], v1_ref[2:3], g1_ref[...], g1t_ref[...])
    C = y1.shape[1]

    # ---- stage 2: ConvTranspose2d(3, s=2, p=1, op=1) -----------------------
    # 4-phase decomposition:  out[2r+pr, 2c+pc] is linear in y1[r, c] and its
    # shifted copies y1[r, c+1], y1[r+1, c], y1[r+1, c+1].  Shifts are exact
    # 0/1 permutation matmuls; taps are packed in w2p block rows/cols.
    y1b = y1.astype(bf16)
    acc = jnp.dot(y1b, w2_ref[0:C, :], preferred_element_type=f32)
    for i in range(3):
        ys = jnp.dot(sh_ref[i], y1b, preferred_element_type=f32)   # exact shift
        acc = acc + jnp.dot(ys.astype(bf16),
                            w2_ref[(i + 1) * C:(i + 2) * C, :],
                            preferred_element_type=f32)
    y2 = acc + v2_ref[0:1]                                       # (P, 4C)
    y2 = _gn_relu(y2, v2_ref[1:2], v2_ref[2:3], g2_ref[...], g2t_ref[...])

    # ---- stage 3: 1x1 conv (block-diag over the 4 phases) + GN + ReLU ------
    y3 = jnp.dot(y2.astype(bf16), w3_ref[...],
                 preferred_element_type=f32) + v3_ref[0:1]       # (P, 4*C3)
    y3 = _gn_relu(y3, v3_ref[1:2], v3_ref[2:3], g3_ref[...], g3t_ref[...])

    o_ref[...] = y3.astype(o_ref.dtype)


# ----------------------------------------------------------------------------
# Host-side helpers.
# ----------------------------------------------------------------------------
def _shift_matrices(H, W):
    """(3, P, P) 0/1 matrices S with (S @ y)[r*W+c] = y[(r+dr)*W + (c+dc)],
    zero when out of range, for (dr, dc) in [(0,1), (1,0), (1,1)]."""
    P = H * W
    r = np.arange(P) // W
    c = np.arange(P) % W
    mats = []
    for dr, dc in ((0, 1), (1, 0), (1, 1)):
        m = np.zeros((P, P), np.float32)
        rr, cc = r + dr, c + dc
        valid = (rr < H) & (cc < W)
        m[np.arange(P)[valid], (rr * W + cc)[valid]] = 1.0
        mats.append(m)
    return jnp.asarray(np.stack(mats), dtype=jnp.bfloat16)


def _one_hot_groups(c):
    cpg = c // GROUPS_IN_NORMALIZATION
    return (jnp.arange(c)[:, None] // cpg ==
            jnp.arange(GROUPS_IN_NORMALIZATION)[None, :]).astype(jnp.float32)


def init_params(key, in_channels, n_filters):
    """Deterministic parameters mirroring the PyTorch module's __init__."""
    c4 = in_channels // 4
    assert c4 % GROUPS_IN_NORMALIZATION == 0
    assert n_filters % GROUPS_IN_NORMALIZATION == 0
    k = jax.random.split(key, 6)
    w1 = jax.random.normal(k[0], (in_channels, c4), jnp.float32) * np.sqrt(2.0 / c4)
    b1 = jax.random.normal(k[1], (c4,), jnp.float32) * 0.01
    # ConvTranspose2d weight in PyTorch layout (Cin, Cout, kh, kw)
    wt = jax.random.normal(k[2], (c4, c4, 3, 3), jnp.float32) * np.sqrt(2.0 / (9 * c4))
    b2 = jax.random.normal(k[3], (c4,), jnp.float32) * 0.01
    w3 = jax.random.normal(k[4], (c4, n_filters), jnp.float32) * np.sqrt(2.0 / n_filters)
    b3 = jax.random.normal(k[5], (n_filters,), jnp.float32) * 0.01
    return dict(w1=w1, b1=b1, g1=jnp.ones((c4,)), be1=jnp.zeros((c4,)),
                wt=wt, b2=b2, g2=jnp.ones((c4,)), be2=jnp.zeros((c4,)),
                w3=w3, b3=b3, g3=jnp.ones((n_filters,)), be3=jnp.zeros((n_filters,)))


def pack_kernel_params(p):
    """Precompute the MXU-friendly operands consumed by the fused kernel."""
    c = p["w1"].shape[1]
    c3 = p["w3"].shape[1]
    wt = p["wt"]
    tap = lambda kh, kw: wt[:, :, kh, kw]                        # (Cin, Cout)
    Z = jnp.zeros((c, c), jnp.float32)
    # row blocks: inputs [y1, y1(c+1), y1(r+1), y1(r+1,c+1)]
    # col blocks: output phases [(even,even), (even,odd), (odd,even), (odd,odd)]
    w2p = jnp.concatenate([
        jnp.concatenate([tap(1, 1), tap(1, 2), tap(2, 1), tap(2, 2)], axis=1),
        jnp.concatenate([Z,         tap(1, 0), Z,         tap(2, 0)], axis=1),
        jnp.concatenate([Z,         Z,         tap(0, 1), tap(0, 2)], axis=1),
        jnp.concatenate([Z,         Z,         Z,         tap(0, 0)], axis=1),
    ], axis=0)                                                   # (4c, 4c)
    w3bd = jnp.kron(jnp.eye(4, dtype=jnp.float32), p["w3"])      # (4c, 4c3)
    gm1 = _one_hot_groups(c)
    gm2 = jnp.tile(gm1, (4, 1))
    gm3 = jnp.tile(_one_hot_groups(c3), (4, 1))
    t4 = lambda v: jnp.tile(v, (4,))
    return dict(
        w1=p["w1"].astype(jnp.bfloat16),
        vec1=jnp.stack([p["b1"], p["g1"], p["be1"]]),
        gmat1=gm1, gmat1_t=gm1.T,
        w2p=w2p.astype(jnp.bfloat16),
        vec2=jnp.stack([t4(p["b2"]), t4(p["g2"]), t4(p["be2"])]),
        gmat2=gm2, gmat2_t=gm2.T,
        w3bd=w3bd.astype(jnp.bfloat16),
        vec3=jnp.stack([t4(p["b3"]), t4(p["g3"]), t4(p["be3"])]),
        gmat3=gm3, gmat3_t=gm3.T,
    )


# ----------------------------------------------------------------------------
# Full DecoderBlock forward (NCHW in / NCHW out, like the PyTorch module).
# ----------------------------------------------------------------------------
@jax.jit
def decoder_block_forward(x_nchw, kparams):
    N, Cin, H, W = x_nchw.shape
    P = H * W
    C34 = kparams["w3bd"].shape[1]
    C3 = C34 // 4

    x = jnp.transpose(x_nchw, (0, 2, 3, 1)).reshape(N, P, Cin)
    shifts = _shift_matrices(H, W)                               # trace-time const

    def rep(a):                                                  # replicated operand
        nd = a.ndim

        def idx(n):
            return (0,) * nd
        return pl.BlockSpec(a.shape, idx)

    out = pl.pallas_call(
        _decoder_block_kernel,
        out_shape=jax.ShapeDtypeStruct((N, P, C34), jnp.float32),
        grid=(N,),
        in_specs=[
            pl.BlockSpec((None, P, Cin), lambda n: (n, 0, 0)),
            rep(shifts),
            rep(kparams["w1"]), rep(kparams["vec1"]),
            rep(kparams["gmat1"]), rep(kparams["gmat1_t"]),
            rep(kparams["w2p"]), rep(kparams["vec2"]),
            rep(kparams["gmat2"]), rep(kparams["gmat2_t"]),
            rep(kparams["w3bd"]), rep(kparams["vec3"]),
            rep(kparams["gmat3"]), rep(kparams["gmat3_t"]),
        ],
        out_specs=pl.BlockSpec((None, P, C34), lambda n: (n, 0, 0)),
        compiler_params=pltpu.CompilerParams(dimension_semantics=("parallel",)),
    )(x, shifts,
      kparams["w1"], kparams["vec1"], kparams["gmat1"], kparams["gmat1_t"],
      kparams["w2p"], kparams["vec2"], kparams["gmat2"], kparams["gmat2_t"],
      kparams["w3bd"], kparams["vec3"], kparams["gmat3"], kparams["gmat3_t"])

    # phase-major (n, r*W+c, (pr,pc,co)) -> NCHW with out[n, co, 2r+pr, 2c+pc]
    y = out.reshape(N, H, W, 2, 2, C3)
    y = jnp.transpose(y, (0, 5, 1, 3, 2, 4))
    return y.reshape(N, C3, 2 * H, 2 * W)


# ----------------------------------------------------------------------------
# Pure-JAX reference (independent transposed-conv formulation via lhs-dilated
# conv), using the same bf16-operand / fp32-accumulate matmul precision.
# ----------------------------------------------------------------------------
def reference_forward(x_nchw, p):
    bf = lambda a: a.astype(jnp.bfloat16)
    g = GROUPS_IN_NORMALIZATION

    def gn_relu(y, gamma, beta):
        n, h, w, c = y.shape
        yr = y.reshape(n, h, w, g, c // g)
        mean = jnp.mean(yr, axis=(1, 2, 4), keepdims=True)
        var = jnp.mean((yr - mean) ** 2, axis=(1, 2, 4), keepdims=True)
        yn = ((yr - mean) * jax.lax.rsqrt(var + EPS)).reshape(n, h, w, c)
        return jnp.maximum(yn * gamma.reshape(1, 1, 1, -1)
                           + beta.reshape(1, 1, 1, -1), 0.0)

    x = jnp.transpose(x_nchw, (0, 2, 3, 1))
    y = jnp.einsum("nhwc,cd->nhwd", bf(x), bf(p["w1"]),
                   preferred_element_type=jnp.float32) + p["b1"]
    y = gn_relu(y, p["g1"], p["be1"])
    # ConvTranspose2d(3, s=2, p=1, op=1) == lhs-dilated conv with flipped kernel
    w2f = jnp.transpose(jnp.flip(p["wt"], axis=(2, 3)), (2, 3, 0, 1))  # HWIO
    y = jax.lax.conv_general_dilated(
        bf(y), bf(w2f), window_strides=(1, 1), padding=((1, 2), (1, 2)),
        lhs_dilation=(2, 2), dimension_numbers=("NHWC", "HWIO", "NHWC"),
        preferred_element_type=jnp.float32) + p["b2"]
    y = gn_relu(y, p["g2"], p["be2"])
    y = jnp.einsum("nhwc,cd->nhwd", bf(y), bf(p["w3"]),
                   preferred_element_type=jnp.float32) + p["b3"]
    y = gn_relu(y, p["g3"], p["be3"])
    return jnp.transpose(y, (0, 3, 1, 2))


if __name__ == "__main__":
    key = jax.random.PRNGKey(0)
    kx, kp = jax.random.split(key)

    # GroupNorm(32, C) requires C % 32 == 0 for both in_channels//4 and
    # n_filters: in_channels=128 -> C=32, n_filters=32, spatial 8x8, batch 2.
    N, Cin, H, W = 2, 128, 8, 8
    n_filters = 32

    x = jax.random.normal(kx, (N, Cin, H, W), jnp.float32)
    params = init_params(kp, Cin, n_filters)
    kparams = pack_kernel_params(params)

    out = jax.block_until_ready(decoder_block_forward(x, kparams))
    assert out.shape == (N, n_filters, 2 * H, 2 * W), out.shape

    ref = jax.block_until_ready(reference_forward(x, params))
    np.testing.assert_allclose(np.asarray(out), np.asarray(ref),
                               rtol=1e-2, atol=1e-2)

    print("KERNEL_OK")
</pallas_src>

<mosaic_0001>
module attributes {stable_mosaic.version = 11 : i64} {
  func.func @_decoder_block_kernel(%arg0: i32, %arg1: memref<1x64x128xf32, #tpu.memory_space<vmem>>, %arg2: memref<3x64x64xbf16, #tpu.memory_space<vmem>>, %arg3: memref<128x32xbf16, #tpu.memory_space<vmem>>, %arg4: memref<3x32xf32, #tpu.memory_space<vmem>>, %arg5: memref<32x32xf32, #tpu.memory_space<vmem>>, %arg6: memref<32x32xf32, #tpu.memory_space<vmem>>, %arg7: memref<128x128xbf16, #tpu.memory_space<vmem>>, %arg8: memref<3x128xf32, #tpu.memory_space<vmem>>, %arg9: memref<128x32xf32, #tpu.memory_space<vmem>>, %arg10: memref<32x128xf32, #tpu.memory_space<vmem>>, %arg11: memref<128x128xbf16, #tpu.memory_space<vmem>>, %arg12: memref<3x128xf32, #tpu.memory_space<vmem>>, %arg13: memref<128x32xf32, #tpu.memory_space<vmem>>, %arg14: memref<32x128xf32, #tpu.memory_space<vmem>>, %arg15: memref<1x64x128xf32, #tpu.memory_space<vmem>>) attributes {dimension_semantics = [#tpu.dimension_semantics<parallel>], iteration_bounds = array<i64: 2>, scalar_prefetch = 0 : i64, scratch_operands = 0 : i64, tpu.core_type = #tpu.core_type<tc>, window_params = [{transform_indices = @transform_0, window_bounds = array<i64: 1, 64, 128>}, {pipeline_mode = #tpu.pipeline_mode<synchronous>, transform_indices = @transform_1, window_bounds = array<i64: 3, 64, 64>}, {pipeline_mode = #tpu.pipeline_mode<synchronous>, transform_indices = @transform_2, window_bounds = array<i64: 128, 32>}, {pipeline_mode = #tpu.pipeline_mode<synchronous>, transform_indices = @transform_3, window_bounds = array<i64: 3, 32>}, {pipeline_mode = #tpu.pipeline_mode<synchronous>, transform_indices = @transform_4, window_bounds = array<i64: 32, 32>}, {pipeline_mode = #tpu.pipeline_mode<synchronous>, transform_indices = @transform_5, window_bounds = array<i64: 32, 32>}, {pipeline_mode = #tpu.pipeline_mode<synchronous>, transform_indices = @transform_6, window_bounds = array<i64: 128, 128>}, {pipeline_mode = #tpu.pipeline_mode<synchronous>, transform_indices = @transform_7, window_bounds = array<i64: 3, 128>}, {pipeline_mode = #tpu.pipeline_mode<synchronous>, transform_indices = @transform_8, window_bounds = array<i64: 128, 32>}, {pipeline_mode = #tpu.pipeline_mode<synchronous>, transform_indices = @transform_9, window_bounds = array<i64: 32, 128>}, {pipeline_mode = #tpu.pipeline_mode<synchronous>, transform_indices = @transform_10, window_bounds = array<i64: 128, 128>}, {pipeline_mode = #tpu.pipeline_mode<synchronous>, transform_indices = @transform_11, window_bounds = array<i64: 3, 128>}, {pipeline_mode = #tpu.pipeline_mode<synchronous>, transform_indices = @transform_12, window_bounds = array<i64: 128, 32>}, {pipeline_mode = #tpu.pipeline_mode<synchronous>, transform_indices = @transform_13, window_bounds = array<i64: 32, 128>}, {transform_indices = @transform_14, window_bounds = array<i64: 1, 64, 128>}]} {
    %c0 = arith.constant 0 : index
    %c0_0 = arith.constant 0 : index
    %c0_1 = arith.constant 0 : index
    %0 = vector.load %arg1[%c0, %c0_0, %c0_1] : memref<1x64x128xf32, #tpu.memory_space<vmem>>, vector<1x64x128xf32>
    %1 = vector.shape_cast %0 : vector<1x64x128xf32> to vector<64x128xf32>
    %2 = arith.truncf %1 : vector<64x128xf32> to vector<64x128xbf16>
    %c0_2 = arith.constant 0 : index
    %c0_3 = arith.constant 0 : index
    %3 = vector.load %arg3[%c0_2, %c0_3] : memref<128x32xbf16, #tpu.memory_space<vmem>>, vector<128x32xbf16>
    %cst = arith.constant dense<0.000000e+00> : vector<64x32xf32>
    %4 = tpu.matmul %2, %3, %cst {dimension_numbers = #tpu.dot_dimension_numbers<[1], [0], [0], [1], [0, 0, 1, 1], [], []>} : vector<64x128xbf16>, vector<128x32xbf16>, vector<64x32xf32> -> vector<64x32xf32>
    %c0_4 = arith.constant 0 : index
    %c0_5 = arith.constant 0 : index
    %5 = vector.load %arg4[%c0_4, %c0_5] : memref<3x32xf32, #tpu.memory_space<vmem>>, vector<1x32xf32>
    %6 = vector.broadcast %5 : vector<1x32xf32> to vector<64x32xf32>
    %7 = arith.addf %4, %6 : vector<64x32xf32>
    %c1 = arith.constant 1 : index
    %c0_6 = arith.constant 0 : index
    %8 = vector.load %arg4[%c1, %c0_6] : memref<3x32xf32, #tpu.memory_space<vmem>>, vector<1x32xf32>
    %c2 = arith.constant 2 : index
    %c0_7 = arith.constant 0 : index
    %9 = vector.load %arg4[%c2, %c0_7] : memref<3x32xf32, #tpu.memory_space<vmem>>, vector<1x32xf32>
    %c0_8 = arith.constant 0 : index
    %c0_9 = arith.constant 0 : index
    %10 = vector.load %arg5[%c0_8, %c0_9] : memref<32x32xf32, #tpu.memory_space<vmem>>, vector<32x32xf32>
    %c0_10 = arith.constant 0 : index
    %c0_11 = arith.constant 0 : index
    %11 = vector.load %arg6[%c0_10, %c0_11] : memref<32x32xf32, #tpu.memory_space<vmem>>, vector<32x32xf32>
    %cst_12 = arith.constant dense<0.000000e+00> : vector<32xf32>
    %12 = vector.multi_reduction <add>, %7, %cst_12 [0] : vector<64x32xf32> to vector<32xf32>
    %13 = vector.shape_cast %12 : vector<32xf32> to vector<1x32xf32>
    %14 = arith.mulf %7, %7 : vector<64x32xf32>
    %cst_13 = arith.constant dense<0.000000e+00> : vector<32xf32>
    %15 = vector.multi_reduction <add>, %14, %cst_13 [0] : vector<64x32xf32> to vector<32xf32>
    %16 = vector.shape_cast %15 : vector<32xf32> to vector<1x32xf32>
    %17 = tpu.concatenate %13, %16 in 0 : vector<1x32xf32>, vector<1x32xf32> -> vector<2x32xf32>
    %cst_14 = arith.constant dense<0.000000e+00> : vector<2x32xf32>
    %18 = tpu.matmul %17, %10, %cst_14 {dimension_numbers = #tpu.dot_dimension_numbers<[1], [0], [0], [1], [0, 0, 1, 1], [], []>} : vector<2x32xf32>, vector<32x32xf32>, vector<2x32xf32> -> vector<2x32xf32>
    %19 = vector.extract_strided_slice %18 {offsets = [0, 0], sizes = [1, 32], strides = [1, 1]} : vector<2x32xf32> to vector<1x32xf32>
    %cst_15 = arith.constant 6.400000e+01 : f32
    %20 = vector.broadcast %cst_15 : f32 to vector<1x32xf32>
    %21 = arith.divf %19, %20 : vector<1x32xf32>
    %22 = vector.extract_strided_slice %18 {offsets = [1, 0], sizes = [1, 32], strides = [1, 1]} : vector<2x32xf32> to vector<1x32xf32>
    %cst_16 = arith.constant 6.400000e+01 : f32
    %23 = vector.broadcast %cst_16 : f32 to vector<1x32xf32>
    %24 = arith.divf %22, %23 : vector<1x32xf32>
    %25 = arith.mulf %21, %21 : vector<1x32xf32>
    %26 = arith.subf %24, %25 : vector<1x32xf32>
    %cst_17 = arith.constant 0.000000e+00 : f32
    %27 = vector.broadcast %cst_17 : f32 to vector<1x32xf32>
    %28 = arith.maximumf %26, %27 : vector<1x32xf32>
    %cst_18 = arith.constant 9.99999974E-6 : f32
    %29 = vector.broadcast %cst_18 : f32 to vector<1x32xf32>
    %30 = arith.addf %28, %29 : vector<1x32xf32>
    %31 = math.rsqrt %30 : vector<1x32xf32>
    %32 = tpu.concatenate %21, %31 in 0 : vector<1x32xf32>, vector<1x32xf32> -> vector<2x32xf32>
    %cst_19 = arith.constant dense<0.000000e+00> : vector<2x32xf32>
    %33 = tpu.matmul %32, %11, %cst_19 {dimension_numbers = #tpu.dot_dimension_numbers<[1], [0], [0], [1], [0, 0, 1, 1], [], []>} : vector<2x32xf32>, vector<32x32xf32>, vector<2x32xf32> -> vector<2x32xf32>
    %34 = vector.extract_strided_slice %33 {offsets = [1, 0], sizes = [1, 32], strides = [1, 1]} : vector<2x32xf32> to vector<1x32xf32>
    %35 = arith.mulf %8, %34 : vector<1x32xf32>
    %36 = vector.extract_strided_slice %33 {offsets = [0, 0], sizes = [1, 32], strides = [1, 1]} : vector<2x32xf32> to vector<1x32xf32>
    %37 = arith.mulf %36, %35 : vector<1x32xf32>
    %38 = arith.subf %9, %37 : vector<1x32xf32>
    %39 = vector.broadcast %35 : vector<1x32xf32> to vector<64x32xf32>
    %40 = arith.mulf %7, %39 : vector<64x32xf32>
    %41 = vector.broadcast %38 : vector<1x32xf32> to vector<64x32xf32>
    %42 = arith.addf %40, %41 : vector<64x32xf32>
    %cst_20 = arith.constant 0.000000e+00 : f32
    %43 = vector.broadcast %cst_20 : f32 to vector<64x32xf32>
    %44 = arith.maximumf %42, %43 : vector<64x32xf32>
    %45 = arith.truncf %44 : vector<64x32xf32> to vector<64x32xbf16>
    %c0_21 = arith.constant 0 : index
    %c0_22 = arith.constant 0 : index
    %46 = vector.load %arg7[%c0_21, %c0_22] : memref<128x128xbf16, #tpu.memory_space<vmem>>, vector<32x128xbf16>
    %cst_23 = arith.constant dense<0.000000e+00> : vector<64x128xf32>
    %47 = tpu.matmul %45, %46, %cst_23 {dimension_numbers = #tpu.dot_dimension_numbers<[1], [0], [0], [1], [0, 0, 1, 1], [], []>} : vector<64x32xbf16>, vector<32x128xbf16>, vector<64x128xf32> -> vector<64x128xf32>
    %c0_24 = arith.constant 0 : index
    %c0_25 = arith.constant 0 : index
    %c0_26 = arith.constant 0 : index
    %48 = vector.load %arg2[%c0_24, %c0_25, %c0_26] : memref<3x64x64xbf16, #tpu.memory_space<vmem>>, vector<1x64x64xbf16>
    %49 = vector.shape_cast %48 : vector<1x64x64xbf16> to vector<64x64xbf16>
    %cst_27 = arith.constant dense<0.000000e+00> : vector<64x32xf32>
    %50 = tpu.matmul %49, %45, %cst_27 {dimension_numbers = #tpu.dot_dimension_numbers<[1], [0], [0], [1], [0, 0, 1, 1], [], []>} : vector<64x64xbf16>, vector<64x32xbf16>, vector<64x32xf32> -> vector<64x32xf32>
    %51 = arith.truncf %50 : vector<64x32xf32> to vector<64x32xbf16>
    %c32 = arith.constant 32 : index
    %c0_28 = arith.constant 0 : index
    %52 = vector.load %arg7[%c32, %c0_28] : memref<128x128xbf16, #tpu.memory_space<vmem>>, vector<32x128xbf16>
    %cst_29 = arith.constant dense<0.000000e+00> : vector<64x128xf32>
    %53 = tpu.matmul %51, %52, %cst_29 {dimension_numbers = #tpu.dot_dimension_numbers<[1], [0], [0], [1], [0, 0, 1, 1], [], []>} : vector<64x32xbf16>, vector<32x128xbf16>, vector<64x128xf32> -> vector<64x128xf32>
    %54 = arith.addf %47, %53 : vector<64x128xf32>
    %c1_30 = arith.constant 1 : index
    %c0_31 = arith.constant 0 : index
    %c0_32 = arith.constant 0 : index
    %55 = vector.load %arg2[%c1_30, %c0_31, %c0_32] : memref<3x64x64xbf16, #tpu.memory_space<vmem>>, vector<1x64x64xbf16>
    %56 = vector.shape_cast %55 : vector<1x64x64xbf16> to vector<64x64xbf16>
    %cst_33 = arith.constant dense<0.000000e+00> : vector<64x32xf32>
    %57 = tpu.matmul %56, %45, %cst_33 {dimension_numbers = #tpu.dot_dimension_numbers<[1], [0], [0], [1], [0, 0, 1, 1], [], []>} : vector<64x64xbf16>, vector<64x32xbf16>, vector<64x32xf32> -> vector<64x32xf32>
    %58 = arith.truncf %57 : vector<64x32xf32> to vector<64x32xbf16>
    %c64 = arith.constant 64 : index
    %c0_34 = arith.constant 0 : index
    %59 = vector.load %arg7[%c64, %c0_34] : memref<128x128xbf16, #tpu.memory_space<vmem>>, vector<32x128xbf16>
    %cst_35 = arith.constant dense<0.000000e+00> : vector<64x128xf32>
    %60 = tpu.matmul %58, %59, %cst_35 {dimension_numbers = #tpu.dot_dimension_numbers<[1], [0], [0], [1], [0, 0, 1, 1], [], []>} : vector<64x32xbf16>, vector<32x128xbf16>, vector<64x128xf32> -> vector<64x128xf32>
    %61 = arith.addf %54, %60 : vector<64x128xf32>
    %c2_36 = arith.constant 2 : index
    %c0_37 = arith.constant 0 : index
    %c0_38 = arith.constant 0 : index
    %62 = vector.load %arg2[%c2_36, %c0_37, %c0_38] : memref<3x64x64xbf16, #tpu.memory_space<vmem>>, vector<1x64x64xbf16>
    %63 = vector.shape_cast %62 : vector<1x64x64xbf16> to vector<64x64xbf16>
    %cst_39 = arith.constant dense<0.000000e+00> : vector<64x32xf32>
    %64 = tpu.matmul %63, %45, %cst_39 {dimension_numbers = #tpu.dot_dimension_numbers<[1], [0], [0], [1], [0, 0, 1, 1], [], []>} : vector<64x64xbf16>, vector<64x32xbf16>, vector<64x32xf32> -> vector<64x32xf32>
    %65 = arith.truncf %64 : vector<64x32xf32> to vector<64x32xbf16>
    %c96 = arith.constant 96 : index
    %c0_40 = arith.constant 0 : index
    %66 = vector.load %arg7[%c96, %c0_40] : memref<128x128xbf16, #tpu.memory_space<vmem>>, vector<32x128xbf16>
    %cst_41 = arith.constant dense<0.000000e+00> : vector<64x128xf32>
    %67 = tpu.matmul %65, %66, %cst_41 {dimension_numbers = #tpu.dot_dimension_numbers<[1], [0], [0], [1], [0, 0, 1, 1], [], []>} : vector<64x32xbf16>, vector<32x128xbf16>, vector<64x128xf32> -> vector<64x128xf32>
    %68 = arith.addf %61, %67 : vector<64x128xf32>
    %c0_42 = arith.constant 0 : index
    %c0_43 = arith.constant 0 : index
    %69 = vector.load %arg8[%c0_42, %c0_43] : memref<3x128xf32, #tpu.memory_space<vmem>>, vector<1x128xf32>
    %70 = vector.broadcast %69 : vector<1x128xf32> to vector<64x128xf32>
    %71 = arith.addf %68, %70 : vector<64x128xf32>
    %c1_44 = arith.constant 1 : index
    %c0_45 = arith.constant 0 : index
    %72 = vector.load %arg8[%c1_44, %c0_45] : memref<3x128xf32, #tpu.memory_space<vmem>>, vector<1x128xf32>
    %c2_46 = arith.constant 2 : index
    %c0_47 = arith.constant 0 : index
    %73 = vector.load %arg8[%c2_46, %c0_47] : memref<3x128xf32, #tpu.memory_space<vmem>>, vector<1x128xf32>
    %c0_48 = arith.constant 0 : index
    %c0_49 = arith.constant 0 : index
    %74 = vector.load %arg9[%c0_48, %c0_49] : memref<128x32xf32, #tpu.memory_space<vmem>>, vector<128x32xf32>
    %c0_50 = arith.constant 0 : index
    %c0_51 = arith.constant 0 : index
    %75 = vector.load %arg10[%c0_50, %c0_51] : memref<32x128xf32, #tpu.memory_space<vmem>>, vector<32x128xf32>
    %cst_52 = arith.constant dense<0.000000e+00> : vector<128xf32>
    %76 = vector.multi_reduction <add>, %71, %cst_52 [0] : vector<64x128xf32> to vector<128xf32>
    %77 = vector.shape_cast %76 : vector<128xf32> to vector<1x128xf32>
    %78 = arith.mulf %71, %71 : vector<64x128xf32>
    %cst_53 = arith.constant dense<0.000000e+00> : vector<128xf32>
    %79 = vector.multi_reduction <add>, %78, %cst_53 [0] : vector<64x128xf32> to vector<128xf32>
    %80 = vector.shape_cast %79 : vector<128xf32> to vector<1x128xf32>
    %81 = tpu.concatenate %77, %80 in 0 : vector<1x128xf32>, vector<1x128xf32> -> vector<2x128xf32>
    %cst_54 = arith.constant dense<0.000000e+00> : vector<2x32xf32>
    %82 = tpu.matmul %81, %74, %cst_54 {dimension_numbers = #tpu.dot_dimension_numbers<[1], [0], [0], [1], [0, 0, 1, 1], [], []>} : vector<2x128xf32>, vector<128x32xf32>, vector<2x32xf32> -> vector<2x32xf32>
    %83 = vector.extract_strided_slice %82 {offsets = [0, 0], sizes = [1, 32], strides = [1, 1]} : vector<2x32xf32> to vector<1x32xf32>
    %cst_55 = arith.constant 2.560000e+02 : f32
    %84 = vector.broadcast %cst_55 : f32 to vector<1x32xf32>
    %85 = arith.divf %83, %84 : vector<1x32xf32>
    %86 = vector.extract_strided_slice %82 {offsets = [1, 0], sizes = [1, 32], strides = [1, 1]} : vector<2x32xf32> to vector<1x32xf32>
    %cst_56 = arith.constant 2.560000e+02 : f32
    %87 = vector.broadcast %cst_56 : f32 to vector<1x32xf32>
    %88 = arith.divf %86, %87 : vector<1x32xf32>
    %89 = arith.mulf %85, %85 : vector<1x32xf32>
    %90 = arith.subf %88, %89 : vector<1x32xf32>
    %cst_57 = arith.constant 0.000000e+00 : f32
    %91 = vector.broadcast %cst_57 : f32 to vector<1x32xf32>
    %92 = arith.maximumf %90, %91 : vector<1x32xf32>
    %cst_58 = arith.constant 9.99999974E-6 : f32
    %93 = vector.broadcast %cst_58 : f32 to vector<1x32xf32>
    %94 = arith.addf %92, %93 : vector<1x32xf32>
    %95 = math.rsqrt %94 : vector<1x32xf32>
    %96 = tpu.concatenate %85, %95 in 0 : vector<1x32xf32>, vector<1x32xf32> -> vector<2x32xf32>
    %cst_59 = arith.constant dense<0.000000e+00> : vector<2x128xf32>
    %97 = tpu.matmul %96, %75, %cst_59 {dimension_numbers = #tpu.dot_dimension_numbers<[1], [0], [0], [1], [0, 0, 1, 1], [], []>} : vector<2x32xf32>, vector<32x128xf32>, vector<2x128xf32> -> vector<2x128xf32>
    %98 = vector.extract_strided_slice %97 {offsets = [1, 0], sizes = [1, 128], strides = [1, 1]} : vector<2x128xf32> to vector<1x128xf32>
    %99 = arith.mulf %72, %98 : vector<1x128xf32>
    %100 = vector.extract_strided_slice %97 {offsets = [0, 0], sizes = [1, 128], strides = [1, 1]} : vector<2x128xf32> to vector<1x128xf32>
    %101 = arith.mulf %100, %99 : vector<1x128xf32>
    %102 = arith.subf %73, %101 : vector<1x128xf32>
    %103 = vector.broadcast %99 : vector<1x128xf32> to vector<64x128xf32>
    %104 = arith.mulf %71, %103 : vector<64x128xf32>
    %105 = vector.broadcast %102 : vector<1x128xf32> to vector<64x128xf32>
    %106 = arith.addf %104, %105 : vector<64x128xf32>
    %cst_60 = arith.constant 0.000000e+00 : f32
    %107 = vector.broadcast %cst_60 : f32 to vector<64x128xf32>
    %108 = arith.maximumf %106, %107 : vector<64x128xf32>
    %109 = arith.truncf %108 : vector<64x128xf32> to vector<64x128xbf16>
    %c0_61 = arith.constant 0 : index
    %c0_62 = arith.constant 0 : index
    %110 = vector.load %arg11[%c0_61, %c0_62] : memref<128x128xbf16, #tpu.memory_space<vmem>>, vector<128x128xbf16>
    %cst_63 = arith.constant dense<0.000000e+00> : vector<64x128xf32>
    %111 = tpu.matmul %109, %110, %cst_63 {dimension_numbers = #tpu.dot_dimension_numbers<[1], [0], [0], [1], [0, 0, 1, 1], [], []>} : vector<64x128xbf16>, vector<128x128xbf16>, vector<64x128xf32> -> vector<64x128xf32>
    %c0_64 = arith.constant 0 : index
    %c0_65 = arith.constant 0 : index
    %112 = vector.load %arg12[%c0_64, %c0_65] : memref<3x128xf32, #tpu.memory_space<vmem>>, vector<1x128xf32>
    %113 = vector.broadcast %112 : vector<1x128xf32> to vector<64x128xf32>
    %114 = arith.addf %111, %113 : vector<64x128xf32>
    %c1_66 = arith.constant 1 : index
    %c0_67 = arith.constant 0 : index
    %115 = vector.load %arg12[%c1_66, %c0_67] : memref<3x128xf32, #tpu.memory_space<vmem>>, vector<1x128xf32>
    %c2_68 = arith.constant 2 : index
    %c0_69 = arith.constant 0 : index
    %116 = vector.load %arg12[%c2_68, %c0_69] : memref<3x128xf32, #tpu.memory_space<vmem>>, vector<1x128xf32>
    %c0_70 = arith.constant 0 : index
    %c0_71 = arith.constant 0 : index
    %117 = vector.load %arg13[%c0_70, %c0_71] : memref<128x32xf32, #tpu.memory_space<vmem>>, vector<128x32xf32>
    %c0_72 = arith.constant 0 : index
    %c0_73 = arith.constant 0 : index
    %118 = vector.load %arg14[%c0_72, %c0_73] : memref<32x128xf32, #tpu.memory_space<vmem>>, vector<32x128xf32>
    %cst_74 = arith.constant dense<0.000000e+00> : vector<128xf32>
    %119 = vector.multi_reduction <add>, %114, %cst_74 [0] : vector<64x128xf32> to vector<128xf32>
    %120 = vector.shape_cast %119 : vector<128xf32> to vector<1x128xf32>
    %121 = arith.mulf %114, %114 : vector<64x128xf32>
    %cst_75 = arith.constant dense<0.000000e+00> : vector<128xf32>
    %122 = vector.multi_reduction <add>, %121, %cst_75 [0] : vector<64x128xf32> to vector<128xf32>
    %123 = vector.shape_cast %122 : vector<128xf32> to vector<1x128xf32>
    %124 = tpu.concatenate %120, %123 in 0 : vector<1x128xf32>, vector<1x128xf32> -> vector<2x128xf32>
    %cst_76 = arith.constant dense<0.000000e+00> : vector<2x32xf32>
    %125 = tpu.matmul %124, %117, %cst_76 {dimension_numbers = #tpu.dot_dimension_numbers<[1], [0], [0], [1], [0, 0, 1, 1], [], []>} : vector<2x128xf32>, vector<128x32xf32>, vector<2x32xf32> -> vector<2x32xf32>
    %126 = vector.extract_strided_slice %125 {offsets = [0, 0], sizes = [1, 32], strides = [1, 1]} : vector<2x32xf32> to vector<1x32xf32>
    %cst_77 = arith.constant 2.560000e+02 : f32
    %127 = vector.broadcast %cst_77 : f32 to vector<1x32xf32>
    %128 = arith.divf %126, %127 : vector<1x32xf32>
    %129 = vector.extract_strided_slice %125 {offsets = [1, 0], sizes = [1, 32], strides = [1, 1]} : vector<2x32xf32> to vector<1x32xf32>
    %cst_78 = arith.constant 2.560000e+02 : f32
    %130 = vector.broadcast %cst_78 : f32 to vector<1x32xf32>
    %131 = arith.divf %129, %130 : vector<1x32xf32>
    %132 = arith.mulf %128, %128 : vector<1x32xf32>
    %133 = arith.subf %131, %132 : vector<1x32xf32>
    %cst_79 = arith.constant 0.000000e+00 : f32
    %134 = vector.broadcast %cst_79 : f32 to vector<1x32xf32>
    %135 = arith.maximumf %133, %134 : vector<1x32xf32>
    %cst_80 = arith.constant 9.99999974E-6 : f32
    %136 = vector.broadcast %cst_80 : f32 to vector<1x32xf32>
    %137 = arith.addf %135, %136 : vector<1x32xf32>
    %138 = math.rsqrt %137 : vector<1x32xf32>
    %139 = tpu.concatenate %128, %138 in 0 : vector<1x32xf32>, vector<1x32xf32> -> vector<2x32xf32>
    %cst_81 = arith.constant dense<0.000000e+00> : vector<2x128xf32>
    %140 = tpu.matmul %139, %118, %cst_81 {dimension_numbers = #tpu.dot_dimension_numbers<[1], [0], [0], [1], [0, 0, 1, 1], [], []>} : vector<2x32xf32>, vector<32x128xf32>, vector<2x128xf32> -> vector<2x128xf32>
    %141 = vector.extract_strided_slice %140 {offsets = [1, 0], sizes = [1, 128], strides = [1, 1]} : vector<2x128xf32> to vector<1x128xf32>
    %142 = arith.mulf %115, %141 : vector<1x128xf32>
    %143 = vector.extract_strided_slice %140 {offsets = [0, 0], sizes = [1, 128], strides = [1, 1]} : vector<2x128xf32> to vector<1x128xf32>
    %144 = arith.mulf %143, %142 : vector<1x128xf32>
    %145 = arith.subf %116, %144 : vector<1x128xf32>
    %146 = vector.broadcast %142 : vector<1x128xf32> to vector<64x128xf32>
    %147 = arith.mulf %114, %146 : vector<64x128xf32>
    %148 = vector.broadcast %145 : vector<1x128xf32> to vector<64x128xf32>
    %149 = arith.addf %147, %148 : vector<64x128xf32>
    %cst_82 = arith.constant 0.000000e+00 : f32
    %150 = vector.broadcast %cst_82 : f32 to vector<64x128xf32>
    %151 = arith.maximumf %149, %150 : vector<64x128xf32>
    %c0_83 = arith.constant 0 : index
    %c0_84 = arith.constant 0 : index
    %c0_85 = arith.constant 0 : index
    %152 = vector.load %arg15[%c0_83, %c0_84, %c0_85] : memref<1x64x128xf32, #tpu.memory_space<vmem>>, vector<1x64x128xf32>
    %153 = vector.shape_cast %152 : vector<1x64x128xf32> to vector<64x128xf32>
    %154 = vector.shape_cast %151 : vector<64x128xf32> to vector<1x64x128xf32>
    tpu.vector_store %arg15[%c0_83, %c0_84, %c0_85], %154 {strides = array<i32>} : memref<1x64x128xf32, #tpu.memory_space<vmem>>, vector<1x64x128xf32>,
    return
  }
  func.func @transform_0(%arg0: i32) -> (i32, i32, i32) {
    %c0_i32 = arith.constant 0 : i32
    %c0_i32_0 = arith.constant 0 : i32
    %c0_i32_1 = arith.constant 0 : i32
    return %arg0, %c0_i32, %c0_i32_0 : i32, i32, i32
  }
  func.func @transform_1(%arg0: i32) -> (i32, i32, i32) {
    %c0_i32 = arith.constant 0 : i32
    %c0_i32_0 = arith.constant 0 : i32
    %c0_i32_1 = arith.constant 0 : i32
    %c0_i32_2 = arith.constant 0 : i32
    return %c0_i32, %c0_i32_0, %c0_i32_1 : i32, i32, i32
  }
  func.func @transform_2(%arg0: i32) -> (i32, i32) {
    %c0_i32 = arith.constant 0 : i32
    %c0_i32_0 = arith.constant 0 : i32
    %c0_i32_1 = arith.constant 0 : i32
    return %c0_i32, %c0_i32_0 : i32, i32
  }
  func.func @transform_3(%arg0: i32) -> (i32, i32) {
    %c0_i32 = arith.constant 0 : i32
    %c0_i32_0 = arith.constant 0 : i32
    %c0_i32_1 = arith.constant 0 : i32
    return %c0_i32, %c0_i32_0 : i32, i32
  }
  func.func @transform_4(%arg0: i32) -> (i32, i32) {
    %c0_i32 = arith.constant 0 : i32
    %c0_i32_0 = arith.constant 0 : i32
    %c0_i32_1 = arith.constant 0 : i32
    return %c0_i32, %c0_i32_0 : i32, i32
  }
  func.func @transform_5(%arg0: i32) -> (i32, i32) {
    %c0_i32 = arith.constant 0 : i32
    %c0_i32_0 = arith.constant 0 : i32
    %c0_i32_1 = arith.constant 0 : i32
    return %c0_i32, %c0_i32_0 : i32, i32
  }
  func.func @transform_6(%arg0: i32) -> (i32, i32) {
    %c0_i32 = arith.constant 0 : i32
    %c0_i32_0 = arith.constant 0 : i32
    %c0_i32_1 = arith.constant 0 : i32
    return %c0_i32, %c0_i32_0 : i32, i32
  }
  func.func @transform_7(%arg0: i32) -> (i32, i32) {
    %c0_i32 = arith.constant 0 : i32
    %c0_i32_0 = arith.constant 0 : i32
    %c0_i32_1 = arith.constant 0 : i32
    return %c0_i32, %c0_i32_0 : i32, i32
  }
  func.func @transform_8(%arg0: i32) -> (i32, i32) {
    %c0_i32 = arith.constant 0 : i32
    %c0_i32_0 = arith.constant 0 : i32
    %c0_i32_1 = arith.constant 0 : i32
    return %c0_i32, %c0_i32_0 : i32, i32
  }
  func.func @transform_9(%arg0: i32) -> (i32, i32) {
    %c0_i32 = arith.constant 0 : i32
    %c0_i32_0 = arith.constant 0 : i32
    %c0_i32_1 = arith.constant 0 : i32
    return %c0_i32, %c0_i32_0 : i32, i32
  }
  func.func @transform_10(%arg0: i32) -> (i32, i32) {
    %c0_i32 = arith.constant 0 : i32
    %c0_i32_0 = arith.constant 0 : i32
    %c0_i32_1 = arith.constant 0 : i32
    return %c0_i32, %c0_i32_0 : i32, i32
  }
  func.func @transform_11(%arg0: i32) -> (i32, i32) {
    %c0_i32 = arith.constant 0 : i32
    %c0_i32_0 = arith.constant 0 : i32
    %c0_i32_1 = arith.constant 0 : i32
    return %c0_i32, %c0_i32_0 : i32, i32
  }
  func.func @transform_12(%arg0: i32) -> (i32, i32) {
    %c0_i32 = arith.constant 0 : i32
    %c0_i32_0 = arith.constant 0 : i32
    %c0_i32_1 = arith.constant 0 : i32
    return %c0_i32, %c0_i32_0 : i32, i32
  }
  func.func @transform_13(%arg0: i32) -> (i32, i32) {
    %c0_i32 = arith.constant 0 : i32
    %c0_i32_0 = arith.constant 0 : i32
    %c0_i32_1 = arith.constant 0 : i32
    return %c0_i32, %c0_i32_0 : i32, i32
  }
  func.func @transform_14(%arg0: i32) -> (i32, i32, i32) {
    %c0_i32 = arith.constant 0 : i32
    %c0_i32_0 = arith.constant 0 : i32
    %c0_i32_1 = arith.constant 0 : i32
    return %arg0, %c0_i32, %c0_i32_0 : i32, i32, i32
  }
}

</mosaic_0001>

<bundles_post_ra>
// kernel: decoder_block_forward.1
= control target key start
LH: loop header
LB: loop body
LE: loop exit
PB: predicated region body
PF: predicated region fallthrough
CT: control target
= control target key end

     0   :  { %19 = vsyncpa [#allocation3], 0  ;;  %s3867_s0 = inlined_call_operand.vmem [shape: f32[2,64,128], index: 0, kind: input, shape index: {}]   ;;  %s3868_s1 = inlined_call_operand.vmem [shape: bf16[3,64,64], index: 1, kind: input, shape index: {}]   ;;  %s3869_s2 = inlined_call_operand.vmem [shape: bf16[128,32], index: 2, kind: input, shape index: {}]   ;;  %s3870_s3 = inlined_call_operand.vmem [shape: f32[3,32], index: 3, kind: input, shape index: {}]   ;;  %s3871_s4 = inlined_call_operand.hbm [shape: f32[32,32], index: 4, kind: input, shape index: {}]   ;;  %s3872_s5 = inlined_call_operand.hbm [shape: f32[32,32], index: 5, kind: input, shape index: {}]   ;;  %s3873_s6 = inlined_call_operand.vmem [shape: bf16[128,128], index: 6, kind: input, shape index: {}]   ;;  %s3874_s7 = inlined_call_operand.vmem [shape: f32[3,128], index: 7, kind: input, shape index: {}]   ;;  %s3875_s8 = inlined_call_operand.vmem [shape: f32[128,32], index: 8, kind: input, shape index: {}]   ;;  %s3876_s9 = inlined_call_operand.hbm [shape: f32[32,128], index: 9, kind: input, shape index: {}]   ;;  %s3877_s10 = inlined_call_operand.vmem [shape: bf16[128,128], index: 10, kind: input, shape index: {}]   ;;  %s3878_s11 = inlined_call_operand.vmem [shape: f32[3,128], index: 11, kind: input, shape index: {}]   ;;  %s3879_s12 = inlined_call_operand.vmem [shape: f32[128,32], index: 12, kind: input, shape index: {}]   ;;  %s3880_s13 = inlined_call_operand.hbm [shape: f32[32,128], index: 13, kind: input, shape index: {}]   ;;  %s3881_s14 = inlined_call_operand.vmem [shape: f32[2,64,128], index: 14, kind: output, shape index: {}]  }
   0x1   :  { %20 = vsyncpa [#allocation5], 0 }
   0x2   :  { %21 = vsyncpa [#allocation8], 0  ;;  %s3200_s29 = smov 0  }
   0x3 LB: > { %s3206_s30 = sadd.s32 4294967295, %s3115_s29   ;;  %p2408_p0 = scmp.ge.s32.totalorder %s3115_s29, 1  ;;  %s3115_s29 = sphi %s3200_s29, %s27_s29  }
   0x4   : > { %p357_p1 = scmp.lt.s32.totalorder %s3115_s29, 3  ;;  %p2927_p2 = scmp.eq.s32.totalorder %s3206_s30, 0 }
   0x5   : > { %s3117_s16 = smov [#allocation4]   ;;  %s3118_s18 = smov [#allocation2]  }
   0x6   : > { %p3211_p3 = pnand %p2408_p0, %p357_p1  ;;  %s391_s17 = sshll.u32 %s3117_s16, 4  ;;  %s392_s17 = int_to_ptr.vmem [resolvable:$true] %s391_s17 }
   0x7   : > { %s378_s19 = sshll.u32 %s3118_s18, 4  ;;  %s3119_s21 = smov [#allocation6]   ;;  %s3217_s19 = int_to_ptr.vmem [resolvable:$true] %s378_s19 }
   0x8   : > { %p2914_p4 = pneg %p3211_p3  ;;  %s413_s22 = sshll.u32 %s3119_s21, 4  ;;  %s3225_s22 = int_to_ptr.vmem [resolvable:$true] %s413_s22 }
   0x9   : > { %s3120_s23 = smov [#allocation7]   ;;  %s3004_s25 = scalar_lea.vmem %s392_s17, 512 }
   0xa   : > { %p3221_p5 = pnand %p2927_p2, %p2914_p4  ;;  %s3227_s24 = sshll.u32 %s3120_s23, 4  ;;  %s436_s24 = int_to_ptr.vmem [resolvable:$true] %s3227_s24 }
   0xb   : > { %p3005_p7 = scmp.ne.s32.totalorder %s392_s17, %s3004_s25  ;;  %p3012_p10 = scmp.lt.s32.totalorder %s392_s17, %s392_s17 }
   0xc   : > { %p2995_p6 = pneg %p3221_p5  ;;  %p3013_p11 = scmp.lt.s32.totalorder %s3004_s25, %s3004_s25 }
   0xe   : > { %p3007_p8 = pnand %p3005_p7, %p2995_p6  ;;  %p3014_p12 = por %p3013_p11, %p3012_p10 }
  0x10   : > { %p3008_p9 = pneg %p3007_p8 }
  0x12   : > { %p3015_p13 = pnand %p3014_p12, %p3008_p9 }
  0x14   : > { %3018 = shalt.err (!%p3015_p13)
}
  0x15   : > { %s3121_s26 = smov 128   ;;  %s3122_s27 = smov 8  }
  0x16   : > { %2920 = dma.hbm_to_vmem [thread:$0]  (!%p3221_p5), %s3872_s5, 512, %s392_s17, [#allocation5], %s3121_s26, %s3121_s26, %s3122_s27  }
  0x17   : > { %s3030_s18 = scalar_lea.vmem %s3217_s19, 512  ;;  %p3038_p7 = scmp.lt.s32.totalorder %s3217_s19, %s3217_s19 }
  0x18   : > { %p3031_p0 = scmp.ne.s32.totalorder %s3217_s19, %s3030_s18  ;;  %p3039_p8 = scmp.lt.s32.totalorder %s3030_s18, %s3030_s18 }
  0x1a   : > { %p3033_p1 = pnand %p3031_p0, %p2995_p6  ;;  %p3040_p9 = por %p3039_p8, %p3038_p7 }
  0x1c   : > { %p3034_p4 = pneg %p3033_p1 }
  0x1e   : > { %p3041_p10 = pnand %p3040_p9, %p3034_p4 }
  0x20   : > { %3044 = shalt.err (!%p3041_p10)
}
  0x21   : > { %2917 = dma.hbm_to_vmem [thread:$0]  (!%p3221_p5), %s3871_s4, 512, %s3217_s19, [#allocation3], %s3121_s26, %s3121_s26, %s3122_s27  }
  0x22   : > { %s3056_s23 = scalar_lea.vmem %s3225_s22, 512  ;;  %p3064_p0 = scmp.lt.s32.totalorder %s3225_s22, %s3225_s22 }
  0x23   : > { %p3057_p11 = scmp.ne.s32.totalorder %s3225_s22, %s3056_s23  ;;  %p3065_p1 = scmp.lt.s32.totalorder %s3056_s23, %s3056_s23 }
  0x25   : > { %p3059_p12 = pnand %p3057_p11, %p2995_p6  ;;  %p3066_p4 = por %p3065_p1, %p3064_p0 }
  0x27   : > { %p3060_p13 = pneg %p3059_p12 }
  0x29   : > { %p3067_p7 = pnand %p3066_p4, %p3060_p13 }
  0x2b   : > { %3070 = shalt.err (!%p3067_p7)
}
  0x2c   : > { %2923 = dma.hbm_to_vmem [thread:$0]  (!%p3221_p5), %s3876_s9, 512, %s3225_s22, [#allocation5], %s3121_s26, %s3121_s26, %s3122_s27  }
  0x2d   : > { %s3082_s28 = scalar_lea.vmem %s436_s24, 512  ;;  %p3090_p11 = scmp.lt.s32.totalorder %s436_s24, %s436_s24 }
  0x2e   : > { %p3083_p8 = scmp.ne.s32.totalorder %s436_s24, %s3082_s28  ;;  %p3091_p12 = scmp.lt.s32.totalorder %s3082_s28, %s3082_s28 }
  0x30   : > { %p3085_p9 = pnand %p3083_p8, %p2995_p6  ;;  %p3092_p13 = por %p3091_p12, %p3090_p11 }
  0x32   : > { %p3086_p10 = pneg %p3085_p9 }
  0x34   : > { %p3093_p0 = pnand %p3092_p13, %p3086_p10 }
  0x36   : > { %3096 = shalt.err (!%p3093_p0)
}
  0x37   : > { %2926 = dma.hbm_to_vmem [thread:$0]  (!%p3221_p5), %s3880_s13, 512, %s436_s24, [#allocation8], %s3121_s26, %s3121_s26, %s3122_s27  }
  0x38   : > { %459 = sbr.rel (%p3211_p3) target bundleno = 2534 (0x9e6), region = 76 }
  0x3d   : > { %3102 = dma.done.wait (%p2927_p2), [#allocation3], 512  }
  0x3e   : > { %3104 = vsyncadd (%p2927_p2), [#allocation3], 4294966784 }
  0x3f   : > { %3106 = dma.done.wait (%p2927_p2), [#allocation5], 1024  }
  0x40   : > { %3108 = vsyncadd (%p2927_p2), [#allocation5], 4294966272 }
  0x41   : > { %3110 = dma.done.wait (%p2927_p2), [#allocation8], 512  }
  0x42   : > { %3112 = vsyncadd (%p2927_p2), [#allocation8], 4294966784  ;;  %p517_p3 = scmp.lt.s32.totalorder %s3206_s30, 1  ;;  %v2951_v0 = vld [vmem:[%s3869_s2 + $0x38] sm:$0xff]   ;;  %v2952_v1 = vld [vmem:[%s3869_s2 + $0x30] sm:$0xff]   ;;  %v3123_v21 = vmov 0.0  }
  0x43   : > { %2640 = vmatprep.subr.bf16.mxu0 %v2951_v0  ;;  %v2953_v2 = vld [vmem:[%s3869_s2 + $0x28] sm:$0xff]   ;;  %v2954_v3 = vld [vmem:[%s3869_s2 + $0x20] sm:$0xff]   ;;  %v2955_v7 = vld [vmem:[%s3869_s2 + $0x18] sm:$0xff]   ;;  %2664 = vmatprep.subr.mxu1 %v3123_v21  ;;  %vm3124_vm0 = vmmov 0   ;;  %vm684_vm1 = vcmask 261120   ;;  %vm735_vm2 = vcmask 1040384  }
  0x44   : > { %s3885_s30 = smov (!%p517_p3, %s3206_s30), 1  ;;  %2641 = vmatpush3.bf16.msra.mxu0 %v2951_v0  ;;  %v2956_v8 = vld [vmem:[%s3869_s2 + $0x10] sm:$0xff]   ;;  %v2957_v9 = vld [vmem:[%s3869_s2 + $0x8] sm:$0xff]   ;;  %v2958_v10 = vld [vmem:[%s3869_s2] sm:$0xff]   ;;  %2672 = vmatprep.mubr.msk.f32.mxu1 %vm3124_vm0, %v3123_v21  ;;  %vm968_vm3 = vcmask 523264  }
  0x45   : > { %s2512_s26 = sshll.u32 %s3885_s30, 6  ;;  %2642 = vmatprep.subr.bf16.mxu0 %v2952_v1  ;;  %v679_v20 = vld [vmem:[#allocation2 + $0x18] sm:$0xff]  ;;  %v678_v22 = vld [vmem:[#allocation2 + $0x10] sm:$0xff]  ;;  %v677_v23 = vld [vmem:[#allocation2 + $0x8] sm:$0xff] }
  0x46   : > { %s3319_s25 = scalar_lea.vmem %s3867_s0, %s2512_s26  ;;  %2665 = vmatpush3.msra.mxu1 %v679_v20  ;;  %v676_v24 = vld [vmem:[#allocation2] sm:$0xff]  ;;  %s526_s24 = scalar_lea.vmem %s3881_s14, %s2512_s26 }
  0x47   : > { %v528_v4 = vld [vmem:[%s3319_s25] sm:$0xff]  ;;  %v529_v5 = vld [vmem:[%s3319_s25 + $0x8] sm:$0xff]  ;;  %v530_v11 = vld [vmem:[%s3319_s25 + $0x10] sm:$0xff]  ;;  %2666 = vmatprep.subr.mxu1 %v3123_v21 }
  0x48   : > { %2643 = vmatpush3.bf16.msra.mxu0 %v2952_v1  ;;  %v536_v6 = vpack.c.bf16 %v529_v5, %v528_v4  ;;  %v531_v12 = vld [vmem:[%s3319_s25 + $0x18] sm:$0xff]  ;;  %v532_v13 = vld [vmem:[%s3319_s25 + $0x20] sm:$0xff]  ;;  %v533_v14 = vld [vmem:[%s3319_s25 + $0x28] sm:$0xff]  ;;  %2667 = vmatpush3.msra.mxu1 %v678_v22 }
  0x49   : > { %2644 = vmatprep.subr.bf16.mxu0 %v2953_v2  ;;  %v537_v15 = vpack.c.bf16 %v531_v12, %v530_v11  ;;  %v538_v16 = vpack.c.bf16 %v533_v14, %v532_v13  ;;  %v534_v17 = vld [vmem:[%s3319_s25 + $0x30] sm:$0xff]  ;;  %v535_v18 = vld [vmem:[%s3319_s25 + $0x38] sm:$0xff]  ;;  %2668 = vmatprep.subr.mxu1 %v3123_v21  ;;  %v2423_v26 = vld [vmem:[%s3870_s3] ss:$0 sm:$0xff] }
  0x4a   : > { %2656 = vmatprep.mubr.bf16.mxu0 %v536_v6  ;;  %v539_v19 = vpack.c.bf16 %v535_v18, %v534_v17  ;;  %2669 = vmatpush3.msra.mxu1 %v677_v23 }
  0x4b   : > { %2670 = vmatprep.subr.mxu1 %v3123_v21 }
  0x4c   : > { %2645 = vmatpush3.bf16.msra.mxu0 %v2953_v2  ;;  %2671 = vmatpush3.msra.mxu1 %v676_v24 }
  0x4d   : > { %2646 = vmatprep.subr.bf16.mxu0 %v2954_v3  ;;  %2675 = vmatprep.subr.mxu1 %v3123_v21 }
  0x50   : > { %2647 = vmatpush3.bf16.msra.mxu0 %v2954_v3 }
  0x51   : > { %2648 = vmatprep.subr.bf16.mxu0 %v2955_v7 }
  0x54   : > { %2649 = vmatpush3.bf16.msra.mxu0 %v2955_v7 }
  0x55   : > { %2650 = vmatprep.subr.bf16.mxu0 %v2956_v8 }
  0x58   : > { %2651 = vmatpush3.bf16.msra.mxu0 %v2956_v8 }
  0x59   : > { %2652 = vmatprep.subr.bf16.mxu0 %v2957_v9 }
  0x5c   : > { %2653 = vmatpush3.bf16.msra.mxu0 %v2957_v9 }
  0x5d   : > { %2654 = vmatprep.subr.bf16.mxu0 %v2958_v10 }
  0x60   : > { %2655 = vmatpush3.bf16.msra.mxu0 %v2958_v10 }
  0x63   : > { %2657 = vmatmul.mubr.bf16.vlgmr.msra.gmra.mxu0 %v537_v15 }
  0x64   : > { %2660 = vmatprep.mubr.bf16.mxu0 %v538_v16 }
  0x6b   : > { %2661 = vmatmul.mubr.bf16.gmra.mxu0 %v539_v19 }
 0x123   : > { %v2658_v25 = vpop.f32.mrf.mxu0 }
 0x124   : > { %v3356_v30 = vadd.f32 %v2658_v25, %v2423_v26 }
 0x125   : > { %v643_v27 = vpop.f32.mrf.mxu0 }
 0x126   : > { %v3354_v28 = vadd.f32 %v2423_v26, %v643_v27  ;;  %v708_v36 = vmul.f32 %v3356_v30, %v3356_v30  ;;  %v688_v40 = vsel %vm684_vm1, %v3356_v30, 0.0 }
 0x127   : > { %v2659_v29 = vpop.f32.mrf.mxu0 }
 0x128   : > { %v706_v32 = vmul.f32 %v3354_v28, %v3354_v28  ;;  %v3360_v33 = vadd.f32 %v2659_v29, %v2423_v26  ;;  %v685_v37 = vsel %vm684_vm1, %v3354_v28, 0.0  ;;  %v717_v50 = vsel %vm684_vm1, %v708_v36, 0.0  ;;  %v681_v36 = vld [vmem:[#allocation4 + $0x8] sm:$0xff] }
 0x129   : > { %v646_v31 = vpop.f32.mrf.mxu0 }
 0x12a   : > { %v3362_v34 = vadd.f32 %v2423_v26, %v646_v31  ;;  %v714_v43 = vsel %vm684_vm1, %v706_v32, 0.0  ;;  %v709_v44 = vmul.f32 %v3360_v33, %v3360_v33  ;;  %v690_v51 = vsel %vm684_vm1, %v3360_v33, 0.0  ;;  %v683_v32 = vld [vmem:[#allocation4 + $0x18] sm:$0xff] }
 0x12b   : > { %v2662_v35 = vpop.f32.mrf.mxu0 }
 0x12c   : > { %v686_v38 = vsel %vm684_vm1, %v3362_v34, 0.0  ;;  %v707_v39 = vmul.f32 %v3362_v34, %v3362_v34  ;;  %v3383_v52 = vadd.f32 %v2662_v35, %v2423_v26  ;;  %v719_v57 = vsel %vm684_vm1, %v709_v44, 0.0  ;;  %v682_v35 = vld [vmem:[#allocation4 + $0x10] sm:$0xff] }
 0x12d   : > { %v687_v41 = vadd.f32 %v686_v38, %v685_v37  ;;  %v659_v42 = vpop.f32.mrf.mxu0  ;;  %v680_v37 = vld [vmem:[#allocation4] sm:$0xff] }
 0x12e   : > { %v715_v45 = vsel %vm684_vm1, %v707_v39, 0.0  ;;  %v3378_v46 = vadd.f32 %v2423_v26, %v659_v42  ;;  %v712_v63 = vmul.f32 %v3383_v52, %v3383_v52  ;;  %v696_v5 = vsel %vm684_vm1, %v3383_v52, 0.0 }
 0x12f   : > { %v689_v47 = vadd.f32 %v688_v40, %v687_v41  ;;  %v716_v48 = vadd.f32 %v715_v45, %v714_v43  ;;  %v2663_v49 = vpop.f32.mrf.mxu0 }
 0x130   : > { %v710_v53 = vmul.f32 %v3378_v46, %v3378_v46  ;;  %v692_v58 = vsel %vm684_vm1, %v3378_v46, 0.0  ;;  %v3390_v59 = vadd.f32 %v2663_v49, %v2423_v26  ;;  %v725_v10 = vsel %vm684_vm1, %v712_v63, 0.0  ;;  %v2959_v49 = vld [vmem:[%s3873_s6 + $0x18] sm:$0xff]   ;;  %v675_v63 = vld [vmem:[%s3870_s3 + $0x2] sm:$0x1] }
 0x131   : > { %v718_v54 = vadd.f32 %v717_v50, %v716_v48  ;;  %v691_v55 = vadd.f32 %v690_v51, %v689_v47  ;;  %v662_v56 = vpop.f32.mrf.mxu0  ;;  %v2960_v50 = vld [vmem:[%s3873_s6 + $0x10] sm:$0xff]   ;;  %2702 = vmatprep.subr.bf16.mxu0 %v2959_v49  ;;  %v2961_v51 = vld [vmem:[%s3868_s1] sm:$0xff]  }
 0x132   : > { %v3392_v60 = vadd.f32 %v2423_v26, %v662_v56  ;;  %v721_v0 = vsel %vm684_vm1, %v710_v53, 0.0  ;;  %v713_v6 = vmul.f32 %v3390_v59, %v3390_v59  ;;  %v698_v11 = vsel %vm684_vm1, %v3390_v59, 0.0  ;;  %2703 = vmatpush3.bf16.msra.mxu0 %v2959_v49  ;;  %v2969_v49 = vld [vmem:[%s3868_s1 + $0x30] sm:$0xff]  }
 0x133   : > { %v693_v61 = vadd.f32 %v692_v58, %v691_v55  ;;  %v720_v62 = vadd.f32 %v719_v57, %v718_v54  ;;  %2704 = vmatprep.subr.bf16.mxu0 %v2960_v50  ;;  %v900_v53 = vlaneseq  ;;  %v674_v55 = vld [vmem:[%s3870_s3 + $0x1] sm:$0x1] }
 0x134   : > { %v694_v1 = vsel %vm684_vm1, %v3392_v60, 0.0  ;;  %v711_v2 = vmul.f32 %v3392_v60, %v3392_v60  ;;  %v727_v14 = vsel %vm684_vm1, %v713_v6, 0.0 }
 0x135   : > { %v722_v3 = vadd.f32 %v721_v0, %v720_v62  ;;  %v695_v4 = vadd.f32 %v694_v1, %v693_v61  ;;  %v901_v54 = vshrl.u32 %v900_v53, 7  ;;  %v2972_v53 = vld [vmem:[%s3868_s1 + $0x48] sm:$0xff]  }
 0x136   : > { %v723_v7 = vsel %vm684_vm1, %v711_v2, 0.0  ;;  %2705 = vmatpush3.bf16.msra.mxu0 %v2960_v50  ;;  %v2970_v50 = vld [vmem:[%s3868_s1 + $0x38] sm:$0xff]  }
 0x137   : > { %v697_v8 = vadd.f32 %v696_v5, %v695_v4  ;;  %v724_v9 = vadd.f32 %v723_v7, %v722_v3  ;;  %v3432_v58 = vsub.s32 0, %v901_v54  ;;  %v2973_v54 = vld [vmem:[%s3868_s1 + $0x50] sm:$0xff]  }
 0x139   : > { %v699_v12 = vadd.f32 %v698_v11, %v697_v8  ;;  %v726_v13 = vadd.f32 %v725_v10, %v724_v9 }
 0x13b   : > { %v700_v15 = vrot.slane %v699_v12, 4  ;;  %v728_v16 = vadd.f32 %v727_v14, %v726_v13 }
 0x13d   : > { %v701_v17 = vadd.f32 %v700_v15, %v699_v12  ;;  %v729_v18 = vrot.slane %v728_v16, 4 }
 0x13f   : > { %v702_v19 = vrot.slane %v701_v17, 2  ;;  %v730_v20 = vadd.f32 %v729_v18, %v728_v16 }
 0x141   : > { %v703_v22 = vadd.f32 %v702_v19, %v701_v17  ;;  %v731_v23 = vrot.slane %v730_v20, 2 }
 0x143   : > { %v704_v24 = vrot.slane %v703_v22, 1  ;;  %v732_v25 = vadd.f32 %v731_v23, %v730_v20 }
 0x145   : > { %v733_v26 = vrot.slane %v732_v25, 1  ;;  %v705_v27 = vadd.f32 %v704_v24, %v703_v22 }
 0x147   : > { %v734_v29 = vadd.f32 %v733_v26, %v732_v25  ;;  %v2965_v25 = vld [vmem:[%s3873_s6 + $0x8] sm:$0xff]  }
 0x148   : > { %v2962_v26 = vld [vmem:[%s3868_s1 + $0x8] sm:$0xff]  }
 0x149   : > { %v736_v31 = vsel %vm735_vm2, %v705_v27, %v734_v29  ;;  %v2963_v27 = vld [vmem:[%s3868_s1 + $0x10] sm:$0xff]   ;;  %v2966_v29 = vld [vmem:[%s3873_s6] sm:$0xff]  }
 0x14a   : > { %2673 = vmatmul.mubr.msk.f32.vlgmr.msra.gmra.mxu1 %vm684_vm1, %v736_v31  ;;  %v2964_v31 = vld [vmem:[%s3868_s1 + $0x18] sm:$0xff]  }
 0x14b   : > { %2683 = vmatprep.mubr.msk.f32.mxu1 %vm3124_vm0, %v3123_v21  ;;  %2676 = vmatpush3.msra.mxu1 %v683_v32 }
 0x14c   : > { %2677 = vmatprep.subr.mxu1 %v3123_v21 }
 0x14d   : > { %2678 = vmatpush3.msra.mxu1 %v682_v35 }
 0x14e   : > { %2679 = vmatprep.subr.mxu1 %v3123_v21 }
 0x14f   : > { %2680 = vmatpush3.msra.mxu1 %v681_v36 }
 0x150   : > { %2681 = vmatprep.subr.mxu1 %v3123_v21 }
 0x151   : > { %2682 = vmatpush3.msra.mxu1 %v680_v37 }
 0x20a   : > { %v806_v38 = vpop.f32.mrf.mxu1 }
 0x20b   : > { %v811_v39 = vmul.f32 0.015625, %v806_v38 }
 0x20c   : > { %v2674_v40 = vpop.f32.mrf.mxu1 }
 0x20d   : > { %v812_v41 = vmul.f32 %v811_v39, %v811_v39 }
 0x20f   : > { %v814_v42 = vrot.slane %v812_v41, 7 }
 0x211   : > { %v816_v43 = vsub.f32 %v811_v39, %v814_v42 }
 0x213   : > { %v817_v44 = vmax.f32 %v816_v43, 0.0 }
 0x215   : > { %v818_v45 = vadd.f32 1e-05, %v817_v44 }
 0x217   : > { %2987 = vrsqrt.f32 %v818_v45  ;;  %v2967_v45 = vld [vmem:[%s3868_s1 + $0x20] sm:$0xff]  }
 0x224   : > { %v2988_v47 = vpop.eup %2987 }
 0x225   : > { %v820_v48 = vsel %vm735_vm2, %v811_v39, %v2988_v47 }
 0x226   : > { %2684 = vmatmul.mubr.msk.f32.vlgmr.msra.gmra.mxu1 %vm684_vm1, %v820_v48  ;;  %v2968_v48 = vld [vmem:[%s3868_s1 + $0x28] sm:$0xff]  }
 0x227   : > { %2694 = vmatprep.mubr.msk.bf16.mxu1 %vm968_vm3, %v2961_v51  ;;  %v2971_v51 = vld [vmem:[%s3868_s1 + $0x40] sm:$0xff]  }
 0x2e6   : > { %v890_v56 = vpop.f32.mrf.mxu1 }
 0x2e7   : > { %v895_v57 = vrot.slane %v890_v56, 1 }
 0x2e8   : > { %v2685_v61 = vpop.f32.mrf.mxu1 }
 0x2e9   : > { %v897_v62 = vmul.f32 %v895_v57, %v674_v55  ;;  %v2974_v55 = vld [vmem:[%s3868_s1 + $0x58] sm:$0xff]   ;;  %v2976_v57 = vld [vmem:[%s3873_s6 + $0x20] sm:$0xff]  }
 0x2ea   : > { %v2977_v61 = vld [vmem:[%s3873_s6 + $0x38] sm:$0xff]  }
 0x2eb   : > { %v898_v0 = vmul.f32 %v897_v62, %v890_v56  ;;  %v903_v1 = vrot.slane %v897_v62, %v3432_v58  ;;  %v2975_v56 = vld [vmem:[%s3873_s6 + $0x28] sm:$0xff]  }
 0x2ed   : > { %v899_v2 = vsub.f32 %v675_v63, %v898_v0  ;;  %v910_v3 = vmul.f32 %v903_v1, %v3383_v52  ;;  %v911_v5 = vmul.f32 %v903_v1, %v3390_v59  ;;  %v908_v6 = vmul.f32 %v903_v1, %v3378_v46 }
 0x2ee   : > { %v909_v7 = vmul.f32 %v903_v1, %v3392_v60  ;;  %v906_v8 = vmul.f32 %v903_v1, %v3356_v30  ;;  %v907_v9 = vmul.f32 %v903_v1, %v3360_v33  ;;  %v904_v59 = vmul.f32 %v903_v1, %v3354_v28 }
 0x2ef   : > { %v915_v4 = vrot.slane %v899_v2, %v3432_v58  ;;  %v905_v46 = vmul.f32 %v903_v1, %v3362_v34 }
 0x2f1   : > { %v922_v10 = vadd.f32 %v915_v4, %v910_v3  ;;  %v923_v11 = vadd.f32 %v915_v4, %v911_v5  ;;  %v920_v12 = vadd.f32 %v915_v4, %v908_v6  ;;  %v921_v13 = vadd.f32 %v915_v4, %v909_v7 }
 0x2f2   : > { %v918_v14 = vadd.f32 %v915_v4, %v906_v8  ;;  %v919_v15 = vadd.f32 %v915_v4, %v907_v9  ;;  %v916_v60 = vadd.f32 %v915_v4, %v904_v59  ;;  %v917_v22 = vadd.f32 %v915_v4, %v905_v46 }
 0x2f3   : > { %v930_v16 = vmax.f32 %v922_v10, 0.0  ;;  %v931_v52 = vmax.f32 %v923_v11, 0.0  ;;  %v928_v17 = vmax.f32 %v920_v12, 0.0  ;;  %v929_v18 = vmax.f32 %v921_v13, 0.0  ;;  %v2978_v13 = vld [vmem:[%s3873_s6 + $0x30] sm:$0xff]  }
 0x2f4   : > { %v926_v33 = vmax.f32 %v918_v14, 0.0  ;;  %v927_v20 = vmax.f32 %v919_v15, 0.0  ;;  %v924_v28 = vmax.f32 %v916_v60, 0.0  ;;  %v925_v24 = vmax.f32 %v917_v22, 0.0 }
 0x2f5   : > { %v3446_v19 = vpack.c.bf16 %v931_v52, %v930_v16  ;;  %v3451_v30 = vpack.c.bf16 %v929_v18, %v928_v17 }
 0x2f6   : > { %v933_v23 = vpack.c.bf16 %v927_v20, %v926_v33  ;;  %v932_v34 = vpack.c.bf16 %v925_v24, %v924_v28 }
 0x2f7   : > { %2686 = vmatprep.subr.bf16.mxu1 %v3446_v19  ;;  %2726 = vmatprep.subr.bf16.mxu0 %v3446_v19 }
 0x2f8   : > { %2687 = vmatpush3.bf16.msra.mxu1 %v3446_v19 }
 0x2f9   : > { %2688 = vmatprep.subr.bf16.mxu1 %v3451_v30 }
 0x2fc   : > { %2689 = vmatpush3.bf16.msra.mxu1 %v3451_v30 }
 0x2fd   : > { %2690 = vmatprep.subr.bf16.mxu1 %v933_v23 }
 0x300   : > { %2691 = vmatpush3.bf16.msra.mxu1 %v933_v23 }
 0x301   : > { %2692 = vmatprep.subr.bf16.mxu1 %v932_v34 }
 0x304   : > { %2693 = vmatpush3.bf16.msra.mxu1 %v932_v34 }
 0x305   : > { %2714 = vmatprep.subr.bf16.mxu1 %v2965_v25 }
 0x307   : > { %2695 = vmatmul.mubr.msk.bf16.vlgmr.msra.gmra.mxu1 %vm968_vm3, %v2962_v26  ;;  %v1682_v26 = vld [vmem:[%s3875_s8 + $0x68] sm:$0xff] }
 0x308   : > { %2698 = vmatprep.mubr.msk.bf16.mxu1 %vm968_vm3, %v2963_v27  ;;  %2715 = vmatpush3.bf16.msra.mxu1 %v2965_v25  ;;  %v1683_v25 = vld [vmem:[%s3875_s8 + $0x70] sm:$0xff]  ;;  %v1681_v27 = vld [vmem:[%s3875_s8 + $0x60] sm:$0xff] }
 0x309   : > { %2716 = vmatprep.subr.bf16.mxu1 %v2966_v29 }
 0x30c   : > { %2717 = vmatpush3.bf16.msra.mxu1 %v2966_v29  ;;  %v1680_v29 = vld [vmem:[%s3875_s8 + $0x58] sm:$0xff] }
 0x30d   : > { %2742 = vmatprep.subr.bf16.mxu1 %v2975_v56 }
 0x30f   : > { %2699 = vmatmul.mubr.msk.bf16.gmra.mxu1 %vm968_vm3, %v2964_v31  ;;  %v1679_v31 = vld [vmem:[%s3875_s8 + $0x50] sm:$0xff] }
 0x310   : > { %2718 = vmatprep.mubr.msk.bf16.mxu1 %vm684_vm1, %v932_v34 }
 0x317   : > { %2719 = vmatmul.mubr.msk.bf16.vlgmr.msra.gmra.mxu1 %vm684_vm1, %v933_v23 }
 0x318   : > { %2722 = vmatprep.mubr.msk.bf16.mxu1 %vm684_vm1, %v3451_v30  ;;  %2743 = vmatpush3.bf16.msra.mxu1 %v2975_v56 }
 0x319   : > { %2744 = vmatprep.subr.bf16.mxu1 %v2976_v57 }
 0x31c   : > { %2745 = vmatpush3.bf16.msra.mxu1 %v2976_v57 }
 0x31d   : > { %2770 = vmatprep.subr.bf16.mxu1 %v2977_v61 }
 0x31f   : > { %2723 = vmatmul.mubr.msk.bf16.gmra.mxu1 %vm684_vm1, %v3446_v19 }
 0x3c7   : > { %v2696_v32 = vpop.f32.mrf.mxu1 }
 0x3c9   : > { %v1015_v35 = vpop.f32.mrf.mxu1 }
 0x3cb   : > { %v2697_v36 = vpop.f32.mrf.mxu1 }
 0x3cc   : > { %v1047_v39 = vpack.c.bf16 %v2697_v36, %v2696_v32  ;;  %v1678_v32 = vld [vmem:[%s3875_s8 + $0x48] sm:$0xff]  ;;  %v1676_v36 = vld [vmem:[%s3875_s8 + $0x38] sm:$0xff] }
 0x3cd   : > { %v1018_v37 = vpop.f32.mrf.mxu1 }
 0x3ce   : > { %v1046_v38 = vpack.c.bf16 %v1018_v37, %v1015_v35  ;;  %v1677_v35 = vld [vmem:[%s3875_s8 + $0x40] sm:$0xff]  ;;  %v1675_v37 = vld [vmem:[%s3875_s8 + $0x30] sm:$0xff] }
 0x3cf   : > { %v2700_v40 = vpop.f32.mrf.mxu1 }
 0x3d0   : > { %2706 = vmatprep.mubr.msk.bf16.mxu0 %vm684_vm1, %v1046_v38  ;;  %v1674_v38 = vld [vmem:[%s3875_s8 + $0x28] sm:$0xff] }
 0x3d1   : > { %v1031_v41 = vpop.f32.mrf.mxu1  ;;  %2707 = vmatmul.mubr.msk.bf16.vlgmr.msra.gmra.mxu0 %vm684_vm1, %v1047_v39  ;;  %v1673_v39 = vld [vmem:[%s3875_s8 + $0x20] sm:$0xff] }
 0x3d2   : > { %2727 = vmatpush3.bf16.msra.mxu0 %v3446_v19 }
 0x3d3   : > { %2728 = vmatprep.subr.bf16.mxu0 %v3451_v30  ;;  %v2701_v42 = vpop.f32.mrf.mxu1 }
 0x3d4   : > { %v1049_v47 = vpack.c.bf16 %v2701_v42, %v2700_v40  ;;  %v1672_v40 = vld [vmem:[%s3875_s8 + $0x18] sm:$0xff]  ;;  %v1670_v42 = vld [vmem:[%s3875_s8 + $0x8] sm:$0xff] }
 0x3d5   : > { %v1034_v43 = vpop.f32.mrf.mxu1 }
 0x3d6   : > { %v1048_v44 = vpack.c.bf16 %v1034_v43, %v1031_v41  ;;  %2729 = vmatpush3.bf16.msra.mxu0 %v3451_v30  ;;  %v1671_v41 = vld [vmem:[%s3875_s8 + $0x10] sm:$0xff]  ;;  %v1669_v43 = vld [vmem:[%s3875_s8] sm:$0xff] }
 0x3d7   : > { %2730 = vmatprep.subr.bf16.mxu0 %v933_v23 }
 0x3d8   : > { %2710 = vmatprep.mubr.msk.bf16.mxu0 %vm684_vm1, %v1048_v44  ;;  %v2720_v44 = vpop.f32.mrf.mxu1 }
 0x3d9   : > { %2711 = vmatmul.mubr.msk.bf16.gmra.mxu0 %vm684_vm1, %v1049_v47 }
 0x3da   : > { %2731 = vmatpush3.bf16.msra.mxu0 %v933_v23  ;;  %2734 = vmatprep.mubr.msk.bf16.mxu0 %vm968_vm3, %v2967_v45  ;;  %v1201_v45 = vpop.f32.mrf.mxu1 }
 0x3db   : > { %2732 = vmatprep.subr.bf16.mxu0 %v932_v34 }
 0x3dc   : > { %v2721_v47 = vpop.f32.mrf.mxu1 }
 0x3de   : > { %2733 = vmatpush3.bf16.msra.mxu0 %v932_v34 }
 0x3df   : > { %2754 = vmatprep.subr.bf16.mxu0 %v3446_v19 }
 0x3e1   : > { %2735 = vmatmul.mubr.msk.bf16.vlgmr.msra.gmra.mxu0 %vm968_vm3, %v2968_v48  ;;  %v1204_v48 = vpop.f32.mrf.mxu1 }
 0x3e2   : > { %2755 = vmatpush3.bf16.msra.mxu0 %v3446_v19  ;;  %2738 = vmatprep.mubr.msk.bf16.mxu0 %vm968_vm3, %v2969_v49 }
 0x3e3   : > { %2756 = vmatprep.subr.bf16.mxu0 %v3451_v30  ;;  %v2724_v49 = vpop.f32.mrf.mxu1 }
 0x3e6   : > { %2757 = vmatpush3.bf16.msra.mxu0 %v3451_v30 }
 0x3e7   : > { %2758 = vmatprep.subr.bf16.mxu0 %v933_v23 }
 0x3e9   : > { %2739 = vmatmul.mubr.msk.bf16.gmra.mxu0 %vm968_vm3, %v2970_v50  ;;  %v1217_v50 = vpop.f32.mrf.mxu1 }
 0x3ea   : > { %2759 = vmatpush3.bf16.msra.mxu0 %v933_v23  ;;  %2762 = vmatprep.mubr.msk.bf16.mxu0 %vm968_vm3, %v2971_v51 }
 0x3eb   : > { %2760 = vmatprep.subr.bf16.mxu0 %v932_v34  ;;  %v2725_v51 = vpop.f32.mrf.mxu1 }
 0x3ee   : > { %2761 = vmatpush3.bf16.msra.mxu0 %v932_v34  ;;  %v1684_v34 = vld [vmem:[%s3875_s8 + $0x78] sm:$0xff] }
 0x3ef   : > { %2782 = vmatprep.subr.mxu0 %v3123_v21 }
 0x3f1   : > { %2763 = vmatmul.mubr.msk.bf16.vlgmr.msra.gmra.mxu0 %vm968_vm3, %v2972_v53  ;;  %v1220_v53 = vpop.f32.mrf.mxu1 }
 0x3f2   : > { %2766 = vmatprep.mubr.msk.bf16.mxu0 %vm968_vm3, %v2973_v54  ;;  %2783 = vmatpush3.msra.mxu0 %v1684_v34 }
 0x3f3   : > { %2784 = vmatprep.subr.mxu0 %v3123_v21 }
 0x3f4   : > { %2785 = vmatpush3.msra.mxu0 %v1683_v25 }
 0x3f5   : > { %2786 = vmatprep.subr.mxu0 %v3123_v21 }
 0x3f6   : > { %2787 = vmatpush3.msra.mxu0 %v1682_v26 }
 0x3f7   : > { %2788 = vmatprep.subr.mxu0 %v3123_v21 }
 0x3f8   : > { %2789 = vmatpush3.msra.mxu0 %v1681_v27 }
 0x3f9   : > { %2767 = vmatmul.mubr.msk.bf16.gmra.mxu0 %vm968_vm3, %v2974_v55  ;;  %2790 = vmatprep.subr.mxu0 %v3123_v21 }
 0x3fa   : > { %2814 = vmatprep.mubr.msk.f32.mxu0 %vm3124_vm0, %v3123_v21  ;;  %2791 = vmatpush3.msra.mxu0 %v1680_v29 }
 0x3fb   : > { %2792 = vmatprep.subr.mxu0 %v3123_v21 }
 0x3fc   : > { %2793 = vmatpush3.msra.mxu0 %v1679_v31 }
 0x3fd   : > { %2794 = vmatprep.subr.mxu0 %v3123_v21 }
 0x3fe   : > { %2795 = vmatpush3.msra.mxu0 %v1678_v32 }
 0x3ff   : > { %2796 = vmatprep.subr.mxu0 %v3123_v21 }
 0x400   : > { %2797 = vmatpush3.msra.mxu0 %v1677_v35 }
 0x401   : > { %2798 = vmatprep.subr.mxu0 %v3123_v21 }
 0x402   : > { %2799 = vmatpush3.msra.mxu0 %v1676_v36 }
 0x403   : > { %2800 = vmatprep.subr.mxu0 %v3123_v21 }
 0x404   : > { %2801 = vmatpush3.msra.mxu0 %v1675_v37 }
 0x405   : > { %2802 = vmatprep.subr.mxu0 %v3123_v21 }
 0x406   : > { %2803 = vmatpush3.msra.mxu0 %v1674_v38 }
 0x407   : > { %2804 = vmatprep.subr.mxu0 %v3123_v21 }
 0x408   : > { %2805 = vmatpush3.msra.mxu0 %v1673_v39 }
 0x409   : > { %2806 = vmatprep.subr.mxu0 %v3123_v21 }
 0x40a   : > { %2807 = vmatpush3.msra.mxu0 %v1672_v40 }
 0x40b   : > { %2808 = vmatprep.subr.mxu0 %v3123_v21 }
 0x40c   : > { %2809 = vmatpush3.msra.mxu0 %v1671_v41 }
 0x40d   : > { %2810 = vmatprep.subr.mxu0 %v3123_v21 }
 0x40e   : > { %2811 = vmatpush3.msra.mxu0 %v1670_v42 }
 0x40f   : > { %2812 = vmatprep.subr.mxu0 %v3123_v21 }
 0x410   : > { %2813 = vmatpush3.msra.mxu0 %v1669_v43 }
 0x411   : > { %2852 = vmatprep.subr.mxu0 %v3123_v21 }
 0x491   : > { %v3535_v62 = vpop.f32.mrf.mxu0 }
 0x493   : > { %v3537_v63 = vpop.f32.mrf.mxu0 }
 0x495   : > { %v3539_v0 = vpop.f32.mrf.mxu0 }
 0x497   : > { %v3541_v1 = vpop.f32.mrf.mxu0 }
 0x499   : > { %v3543_v2 = vpop.f32.mrf.mxu0 }
 0x49b   : > { %v3545_v3 = vpop.f32.mrf.mxu0 }
 0x49d   : > { %v3547_v4 = vpop.f32.mrf.mxu0 }
 0x49f   : > { %v3549_v5 = vpop.f32.mrf.mxu0 }
 0x4a1   : > { %v2736_v6 = vpop.f32.mrf.mxu0 }
 0x4a3   : > { %v1307_v7 = vpop.f32.mrf.mxu0 }
 0x4a5   : > { %v2737_v8 = vpop.f32.mrf.mxu0 }
 0x4a6   : > { %v1339_v11 = vpack.c.bf16 %v2737_v8, %v2736_v6 }
 0x4a7   : > { %v1310_v9 = vpop.f32.mrf.mxu0 }
 0x4a8   : > { %v1338_v10 = vpack.c.bf16 %v1310_v9, %v1307_v7  ;;  %v1202_v9 = vadd.f32 %v1201_v45, %v3537_v63 }
 0x4a9   : > { %v2740_v12 = vpop.f32.mrf.mxu0 }
 0x4aa   : > { %2746 = vmatprep.mubr.msk.bf16.mxu1 %vm684_vm1, %v1338_v10 }
 0x4ab   : > { %v1323_v14 = vpop.f32.mrf.mxu0  ;;  %2747 = vmatmul.mubr.msk.bf16.vlgmr.msra.gmra.mxu1 %vm684_vm1, %v1339_v11  ;;  %v1210_v11 = vadd.f32 %v2720_v44, %v3535_v62  ;;  %v1218_v62 = vadd.f32 %v1217_v50, %v3545_v3 }
 0x4ac   : > { %2771 = vmatpush3.bf16.msra.mxu1 %v2977_v61 }
 0x4ad   : > { %v2741_v15 = vpop.f32.mrf.mxu0  ;;  %2772 = vmatprep.subr.bf16.mxu1 %v2978_v13 }
 0x4ae   : > { %v1341_v17 = vpack.c.bf16 %v2741_v15, %v2740_v12  ;;  %v1205_v15 = vadd.f32 %v1204_v48, %v3541_v1 }
 0x4af   : > { %v1326_v16 = vpop.f32.mrf.mxu0 }
 0x4b0   : > { %v1340_v52 = vpack.c.bf16 %v1326_v16, %v1323_v14  ;;  %2773 = vmatpush3.bf16.msra.mxu1 %v2978_v13  ;;  %v1213_v13 = vadd.f32 %v2721_v47, %v3539_v0 }
 0x4b1   : > { %v2764_v18 = vpop.f32.mrf.mxu0  ;;  %2817 = vmatprep.subr.mxu1 %v3123_v21 }
 0x4b2   : > { %2750 = vmatprep.mubr.msk.bf16.mxu1 %vm684_vm1, %v1340_v52 }
 0x4b3   : > { %2751 = vmatmul.mubr.msk.bf16.gmra.mxu1 %vm684_vm1, %v1341_v17  ;;  %v1518_v59 = vpop.f32.mrf.mxu0 }
 0x4b5   : > { %v2765_v19 = vpop.f32.mrf.mxu0 }
 0x4b6   : > { %v1550_v30 = vpack.c.bf16 %v2765_v19, %v2764_v18 }
 0x4b7   : > { %v1521_v46 = vpop.f32.mrf.mxu0 }
 0x4b8   : > { %v1549_v60 = vpack.c.bf16 %v1521_v46, %v1518_v59  ;;  %v2498_v46 = vld [vmem:[%s3874_s7] ss:$0 sm:$0xff] }
 0x4b9   : > { %v2768_v33 = vpop.f32.mrf.mxu0 }
 0x4ba   : > { %2774 = vmatprep.mubr.msk.bf16.mxu1 %vm684_vm1, %v1549_v60 }
 0x4bb   : > { %v1534_v20 = vpop.f32.mrf.mxu0  ;;  %2775 = vmatmul.mubr.msk.bf16.vlgmr.msra.gmra.mxu1 %vm684_vm1, %v1550_v30 }
 0x4bd   : > { %v2769_v22 = vpop.f32.mrf.mxu0 }
 0x4be   : > { %v1552_v24 = vpack.c.bf16 %v2769_v22, %v2768_v33  ;;  %v1226_v33 = vadd.f32 %v2724_v49, %v3543_v2 }
 0x4bf   : > { %v1537_v23 = vpop.f32.mrf.mxu0 }
 0x4c0   : > { %v1551_v28 = vpack.c.bf16 %v1537_v23, %v1534_v20 }
 0x4c2   : > { %2778 = vmatprep.mubr.msk.bf16.mxu1 %vm684_vm1, %v1551_v28  ;;  %v1229_v28 = vadd.f32 %v2725_v51, %v3547_v4 }
 0x4c3   : > { %2779 = vmatmul.mubr.msk.bf16.gmra.mxu1 %vm684_vm1, %v1552_v24  ;;  %v1221_v24 = vadd.f32 %v1220_v53, %v3549_v5 }
 0x4c4   : > { %2825 = vmatprep.mubr.msk.f32.mxu1 %vm3124_vm0, %v3123_v21 }
 0x56b   : > { %v2748_v54 = vpop.f32.mrf.mxu1 }
 0x56c   : > { %v1437_v16 = vadd.f32 %v2748_v54, %v1210_v11 }
 0x56d   : > { %v1404_v55 = vpop.f32.mrf.mxu1 }
 0x56e   : > { %v1435_v12 = vadd.f32 %v1404_v55, %v1202_v9 }
 0x56f   : > { %v2749_v56 = vpop.f32.mrf.mxu1 }
 0x570   : > { %v1438_v17 = vadd.f32 %v2749_v56, %v1213_v13 }
 0x571   : > { %v1407_v57 = vpop.f32.mrf.mxu1 }
 0x572   : > { %v1436_v59 = vadd.f32 %v1407_v57, %v1205_v15 }
 0x573   : > { %v2752_v61 = vpop.f32.mrf.mxu1 }
 0x574   : > { %v1441_v34 = vadd.f32 %v2752_v61, %v1226_v33  ;;  %v2979_v33 = vld [vmem:[%s3877_s10 + $0x38] sm:$0xff]  }
 0x575   : > { %v1420_v6 = vpop.f32.mrf.mxu1 }
 0x576   : > { %v1439_v20 = vadd.f32 %v1420_v6, %v1218_v62  ;;  %v1686_v62 = vld [vmem:[#allocation6 + $0x8] sm:$0xff] }
 0x577   : > { %v2753_v7 = vpop.f32.mrf.mxu1 }
 0x578   : > { %v1442_v31 = vadd.f32 %v2753_v7, %v1229_v28 }
 0x579   : > { %v1423_v8 = vpop.f32.mrf.mxu1 }
 0x57a   : > { %v1440_v32 = vadd.f32 %v1423_v8, %v1221_v24 }
 0x57b   : > { %v2776_v10 = vpop.f32.mrf.mxu1 }
 0x57c   : > { %v1648_v19 = vadd.f32 %v2776_v10, %v1437_v16 }
 0x57d   : > { %v1615_v14 = vpop.f32.mrf.mxu1 }
 0x57e   : > { %v1646_v52 = vadd.f32 %v1615_v14, %v1435_v12  ;;  %v3640_v22 = vadd.f32 %v2498_v46, %v1648_v19 }
 0x57f   : > { %v2777_v18 = vpop.f32.mrf.mxu1 }
 0x580   : > { %v1649_v63 = vadd.f32 %v2777_v18, %v1438_v17  ;;  %v3637_v30 = vadd.f32 %v2498_v46, %v1646_v52  ;;  %v1704_v5 = vmul.f32 %v3640_v22, %v3640_v22 }
 0x581   : > { %v1618_v60 = vpop.f32.mrf.mxu1 }
 0x582   : > { %v1647_v0 = vadd.f32 %v1618_v60, %v1436_v59  ;;  %v3646_v25 = vadd.f32 %v2498_v46, %v1649_v63  ;;  %v1702_v3 = vmul.f32 %v3637_v30, %v3637_v30  ;;  %v1688_v63 = vld [vmem:[#allocation6 + $0x18] sm:$0xff]  ;;  %v1687_v60 = vld [vmem:[#allocation6 + $0x10] sm:$0xff] }
 0x583   : > { %v2780_v1 = vpop.f32.mrf.mxu1  ;;  %2818 = vmatpush3.msra.mxu1 %v1688_v63  ;;  %v2069_v63 = vld [vmem:[%s3879_s12 + $0x68] sm:$0xff] }
 0x584   : > { %v3642_v23 = vadd.f32 %v2498_v46, %v1647_v0  ;;  %v1652_v35 = vadd.f32 %v2780_v1, %v1441_v34  ;;  %v1705_v39 = vmul.f32 %v3646_v25, %v3646_v25  ;;  %2819 = vmatprep.subr.mxu1 %v3123_v21  ;;  %v1685_v0 = vld [vmem:[#allocation6] sm:$0xff] }
 0x585   : > { %v1631_v26 = vpop.f32.mrf.mxu1  ;;  %2820 = vmatpush3.msra.mxu1 %v1687_v60  ;;  %v2068_v60 = vld [vmem:[%s3879_s12 + $0x60] sm:$0xff] }
 0x586   : > { %v1689_v2 = vadd.f32 %v3642_v23, %v3637_v30  ;;  %v1703_v27 = vmul.f32 %v3642_v23, %v3642_v23  ;;  %v1650_v29 = vadd.f32 %v1631_v26, %v1439_v20  ;;  %v3662_v45 = vadd.f32 %v2498_v46, %v1652_v35  ;;  %2821 = vmatprep.subr.mxu1 %v3123_v21  ;;  %v2982_v35 = vld [vmem:[%s3877_s10 + $0x20] sm:$0xff]  }
 0x587   : > { %v2781_v4 = vpop.f32.mrf.mxu1  ;;  %2822 = vmatpush3.msra.mxu1 %v1686_v62  ;;  %v2067_v62 = vld [vmem:[%s3879_s12 + $0x58] sm:$0xff] }
 0x588   : > { %v1690_v36 = vadd.f32 %v1689_v2, %v3640_v22  ;;  %v1710_v37 = vadd.f32 %v1703_v27, %v1702_v3  ;;  %v3657_v38 = vadd.f32 %v2498_v46, %v1650_v29  ;;  %v1653_v43 = vadd.f32 %v2781_v4, %v1442_v31  ;;  %2823 = vmatprep.subr.mxu1 %v3123_v21  ;;  %v2980_v29 = vld [vmem:[%s3877_s10 + $0x30] sm:$0xff]   ;;  %v2983_v4 = vld [vmem:[%s3877_s10 + $0x18] sm:$0xff]  }
 0x589   : > { %v1634_v40 = vpop.f32.mrf.mxu1  ;;  %v1708_v56 = vmul.f32 %v3662_v45, %v3662_v45  ;;  %2824 = vmatpush3.msra.mxu1 %v1685_v0  ;;  %v2066_v0 = vld [vmem:[%s3879_s12 + $0x50] sm:$0xff] }
 0x58a   : > { %v1711_v41 = vadd.f32 %v1710_v37, %v1704_v5  ;;  %v1691_v42 = vadd.f32 %v1690_v36, %v3646_v25  ;;  %v1651_v44 = vadd.f32 %v1634_v40, %v1440_v32  ;;  %v1706_v48 = vmul.f32 %v3657_v38, %v3657_v38  ;;  %2828 = vmatprep.subr.bf16.mxu1 %v2979_v33  ;;  %v2981_v32 = vld [vmem:[%s3877_s10 + $0x28] sm:$0xff]   ;;  %v2984_v5 = vld [vmem:[%s3877_s10 + $0x10] sm:$0xff]   ;;  %v2986_v37 = vld [vmem:[%s3877_s10] sm:$0xff]  }
 0x58b   : > { %v3669_v53 = vadd.f32 %v2498_v46, %v1653_v43  ;;  %v2985_v36 = vld [vmem:[%s3877_s10 + $0x8] sm:$0xff]  }
 0x58c   : > { %v1692_v47 = vadd.f32 %v1691_v42, %v3657_v38  ;;  %v1712_v49 = vadd.f32 %v1711_v41, %v1705_v39  ;;  %v3667_v50 = vadd.f32 %v2498_v46, %v1651_v44  ;;  %v1667_v39 = vld [vmem:[%s3874_s7 + $0x1] sm:$0x1]  ;;  %v1668_v44 = vld [vmem:[%s3874_s7 + $0x2] sm:$0x1] }
 0x58d   : > { %v1709_v6 = vmul.f32 %v3669_v53, %v3669_v53 }
 0x58e   : > { %v1713_v51 = vadd.f32 %v1712_v49, %v1706_v48  ;;  %v1693_v54 = vadd.f32 %v1692_v47, %v3667_v50  ;;  %v1707_v55 = vmul.f32 %v3667_v50, %v3667_v50 }
 0x590   : > { %v1694_v57 = vadd.f32 %v1693_v54, %v3662_v45  ;;  %v1714_v61 = vadd.f32 %v1713_v51, %v1707_v55 }
 0x592   : > { %v1695_v7 = vadd.f32 %v1694_v57, %v3669_v53  ;;  %v1715_v8 = vadd.f32 %v1714_v61, %v1708_v56 }
 0x594   : > { %v1696_v9 = vrot.slane %v1695_v7, 4  ;;  %v1716_v10 = vadd.f32 %v1715_v8, %v1709_v6 }
 0x596   : > { %v1697_v11 = vadd.f32 %v1696_v9, %v1695_v7  ;;  %v1717_v12 = vrot.slane %v1716_v10, 4 }
 0x598   : > { %v1698_v13 = vrot.slane %v1697_v11, 2  ;;  %v1718_v14 = vadd.f32 %v1717_v12, %v1716_v10 }
 0x59a   : > { %v1699_v15 = vadd.f32 %v1698_v13, %v1697_v11  ;;  %v1719_v16 = vrot.slane %v1718_v14, 2 }
 0x59c   : > { %v1700_v52 = vrot.slane %v1699_v15, 1  ;;  %v1720_v17 = vadd.f32 %v1719_v16, %v1718_v14 }
 0x59e   : > { %v1721_v18 = vrot.slane %v1720_v17, 1  ;;  %v1701_v59 = vadd.f32 %v1700_v52, %v1699_v15 }
 0x5a0   : > { %v1722_v19 = vadd.f32 %v1721_v18, %v1720_v17 }
 0x5a2   : > { %v1723_v46 = vsel %vm735_vm2, %v1701_v59, %v1722_v19 }
 0x5a3   : > { %2815 = vmatmul.mubr.f32.vlgmr.msra.gmra.mxu0 %v1723_v46 }
 0x5a4   : > { %2884 = vmatprep.mubr.msk.f32.mxu0 %vm3124_vm0, %v3123_v21 }
 0x663   : > { %v1790_v1 = vpop.f32.mrf.mxu0 }
 0x664   : > { %v1795_v20 = vmul.f32 0.00390625, %v1790_v1  ;;  %v2064_v1 = vld [vmem:[%s3879_s12 + $0x40] sm:$0xff] }
 0x665   : > { %v2816_v28 = vpop.f32.mrf.mxu0 }
 0x666   : > { %v1796_v24 = vmul.f32 %v1795_v20, %v1795_v20  ;;  %v2062_v28 = vld [vmem:[%s3879_s12 + $0x30] sm:$0xff] }
 0x668   : > { %v1798_v34 = vrot.slane %v1796_v24, 7  ;;  %v2061_v24 = vld [vmem:[%s3879_s12 + $0x28] sm:$0xff] }
 0x66a   : > { %v1800_v26 = vsub.f32 %v1795_v20, %v1798_v34  ;;  %v2060_v34 = vld [vmem:[%s3879_s12 + $0x20] sm:$0xff] }
 0x66c   : > { %v1801_v3 = vmax.f32 %v1800_v26, 0.0  ;;  %v2059_v26 = vld [vmem:[%s3879_s12 + $0x18] sm:$0xff] }
 0x66e   : > { %v1802_v2 = vadd.f32 1e-05, %v1801_v3  ;;  %v2058_v3 = vld [vmem:[%s3879_s12 + $0x10] sm:$0xff] }
 0x670   : > { %2989 = vrsqrt.f32 %v1802_v2  ;;  %v2057_v2 = vld [vmem:[%s3879_s12 + $0x8] sm:$0xff] }
 0x67d   : > { %v2990_v27 = vpop.eup %2989 }
 0x67e   : > { %v1804_v31 = vsel %vm735_vm2, %v1795_v20, %v2990_v27  ;;  %v2063_v20 = vld [vmem:[%s3879_s12 + $0x38] sm:$0xff]  ;;  %v2056_v27 = vld [vmem:[%s3879_s12] sm:$0xff] }
 0x67f   : > { %2826 = vmatmul.mubr.msk.f32.vlgmr.msra.gmra.mxu1 %vm684_vm1, %v1804_v31 }
 0x680   : > { %2829 = vmatpush3.bf16.msra.mxu1 %v2979_v33  ;;  %v2065_v33 = vld [vmem:[%s3879_s12 + $0x48] sm:$0xff] }
 0x681   : > { %2830 = vmatprep.subr.bf16.mxu1 %v2980_v29 }
 0x684   : > { %2831 = vmatpush3.bf16.msra.mxu1 %v2980_v29 }
 0x685   : > { %2832 = vmatprep.subr.bf16.mxu1 %v2981_v32 }
 0x688   : > { %2833 = vmatpush3.bf16.msra.mxu1 %v2981_v32  ;;  %v2500_v32 = vld [vmem:[%s3878_s11] ss:$0 sm:$0xff] }
 0x689   : > { %2834 = vmatprep.subr.bf16.mxu1 %v2982_v35 }
 0x68c   : > { %2835 = vmatpush3.bf16.msra.mxu1 %v2982_v35 }
 0x68d   : > { %2836 = vmatprep.subr.bf16.mxu1 %v2983_v4 }
 0x690   : > { %2837 = vmatpush3.bf16.msra.mxu1 %v2983_v4 }
 0x691   : > { %2838 = vmatprep.subr.bf16.mxu1 %v2984_v5 }
 0x694   : > { %2839 = vmatpush3.bf16.msra.mxu1 %v2984_v5 }
 0x695   : > { %2840 = vmatprep.subr.bf16.mxu1 %v2985_v36 }
 0x698   : > { %2841 = vmatpush3.bf16.msra.mxu1 %v2985_v36 }
 0x699   : > { %2842 = vmatprep.subr.bf16.mxu1 %v2986_v37 }
 0x69c   : > { %2843 = vmatpush3.bf16.msra.mxu1 %v2986_v37 }
 0x69d   : > { %2887 = vmatprep.subr.mxu1 %v3123_v21 }
 0x73f   : > { %v1874_v40 = vpop.f32.mrf.mxu1 }
 0x740   : > { %v1879_v41 = vrot.slane %v1874_v40, 1 }
 0x741   : > { %v2827_v42 = vpop.f32.mrf.mxu1 }
 0x742   : > { %v1881_v43 = vmul.f32 %v1879_v41, %v1667_v39 }
 0x744   : > { %v1882_v47 = vmul.f32 %v1881_v43, %v1874_v40  ;;  %v1887_v48 = vrot.slane %v1881_v43, %v3432_v58 }
 0x746   : > { %v1883_v49 = vsub.f32 %v1668_v44, %v1882_v47  ;;  %v1888_v51 = vmul.f32 %v1887_v48, %v3637_v30  ;;  %v1889_v55 = vmul.f32 %v1887_v48, %v3642_v23  ;;  %v1890_v56 = vmul.f32 %v1887_v48, %v3640_v22 }
 0x747   : > { %v1891_v57 = vmul.f32 %v1887_v48, %v3646_v25  ;;  %v1892_v61 = vmul.f32 %v1887_v48, %v3657_v38  ;;  %v1893_v6 = vmul.f32 %v1887_v48, %v3667_v50  ;;  %v1894_v22 = vmul.f32 %v1887_v48, %v3662_v45  ;;  %v2071_v45 = vld [vmem:[%s3879_s12 + $0x78] sm:$0xff] }
 0x748   : > { %v1899_v54 = vrot.slane %v1883_v49, %v3432_v58  ;;  %v1895_v25 = vmul.f32 %v1887_v48, %v3669_v53  ;;  %2853 = vmatpush3.msra.mxu0 %v2071_v45  ;;  %v2070_v53 = vld [vmem:[%s3879_s12 + $0x70] sm:$0xff] }
 0x749   : > { %2854 = vmatprep.subr.mxu0 %v3123_v21 }
 0x74a   : > { %v1900_v7 = vadd.f32 %v1899_v54, %v1888_v51  ;;  %v1901_v8 = vadd.f32 %v1899_v54, %v1889_v55  ;;  %v1902_v9 = vadd.f32 %v1899_v54, %v1890_v56  ;;  %v1903_v10 = vadd.f32 %v1899_v54, %v1891_v57  ;;  %2855 = vmatpush3.msra.mxu0 %v2070_v53 }
 0x74b   : > { %v1904_v11 = vadd.f32 %v1899_v54, %v1892_v61  ;;  %v1905_v12 = vadd.f32 %v1899_v54, %v1893_v6  ;;  %v1906_v17 = vadd.f32 %v1899_v54, %v1894_v22  ;;  %v1907_v50 = vadd.f32 %v1899_v54, %v1895_v25  ;;  %2856 = vmatprep.subr.mxu0 %v3123_v21 }
 0x74c   : > { %v1908_v13 = vmax.f32 %v1900_v7, 0.0  ;;  %v1909_v30 = vmax.f32 %v1901_v8, 0.0  ;;  %v1910_v14 = vmax.f32 %v1902_v9, 0.0  ;;  %v1911_v15 = vmax.f32 %v1903_v10, 0.0  ;;  %2857 = vmatpush3.msra.mxu0 %v2069_v63 }
 0x74d   : > { %v1912_v16 = vmax.f32 %v1904_v11, 0.0  ;;  %v1913_v23 = vmax.f32 %v1905_v12, 0.0  ;;  %v1914_v59 = vmax.f32 %v1906_v17, 0.0  ;;  %v1915_v19 = vmax.f32 %v1907_v50, 0.0  ;;  %2858 = vmatprep.subr.mxu0 %v3123_v21 }
 0x74e   : > { %v1916_v52 = vpack.c.bf16 %v1909_v30, %v1908_v13  ;;  %v1917_v38 = vpack.c.bf16 %v1911_v15, %v1910_v14  ;;  %2859 = vmatpush3.msra.mxu0 %v2068_v60 }
 0x74f   : > { %v1918_v18 = vpack.c.bf16 %v1913_v23, %v1912_v16  ;;  %v1919_v46 = vpack.c.bf16 %v1915_v19, %v1914_v59  ;;  %2860 = vmatprep.subr.mxu0 %v3123_v21 }
 0x750   : > { %2844 = vmatprep.mubr.bf16.mxu1 %v1916_v52  ;;  %2861 = vmatpush3.msra.mxu0 %v2067_v62 }
 0x751   : > { %2845 = vmatmul.mubr.bf16.vlgmr.msra.gmra.mxu1 %v1917_v38  ;;  %2862 = vmatprep.subr.mxu0 %v3123_v21 }
 0x752   : > { %2848 = vmatprep.mubr.bf16.mxu1 %v1918_v18  ;;  %2863 = vmatpush3.msra.mxu0 %v2066_v0 }
 0x753   : > { %2864 = vmatprep.subr.mxu0 %v3123_v21 }
 0x754   : > { %2865 = vmatpush3.msra.mxu0 %v2065_v33  ;;  %v2075_v33 = vld [vmem:[#allocation7 + $0x18] sm:$0xff] }
 0x755   : > { %2866 = vmatprep.subr.mxu0 %v3123_v21  ;;  %2888 = vmatpush3.msra.mxu1 %v2075_v33 }
 0x756   : > { %2867 = vmatpush3.msra.mxu0 %v2064_v1  ;;  %2889 = vmatprep.subr.mxu1 %v3123_v21  ;;  %v2074_v1 = vld [vmem:[#allocation7 + $0x10] sm:$0xff] }
 0x757   : > { %2868 = vmatprep.subr.mxu0 %v3123_v21  ;;  %2890 = vmatpush3.msra.mxu1 %v2074_v1 }
 0x758   : > { %2869 = vmatpush3.msra.mxu0 %v2063_v20  ;;  %2891 = vmatprep.subr.mxu1 %v3123_v21  ;;  %v2073_v20 = vld [vmem:[#allocation7 + $0x8] sm:$0xff] }
 0x759   : > { %2849 = vmatmul.mubr.bf16.gmra.mxu1 %v1919_v46  ;;  %2870 = vmatprep.subr.mxu0 %v3123_v21 }
 0x75a   : > { %2895 = vmatprep.mubr.msk.f32.mxu1 %vm3124_vm0, %v3123_v21  ;;  %2871 = vmatpush3.msra.mxu0 %v2062_v28  ;;  %v2072_v28 = vld [vmem:[#allocation7] sm:$0xff] }
 0x75b   : > { %2872 = vmatprep.subr.mxu0 %v3123_v21  ;;  %2892 = vmatpush3.msra.mxu1 %v2073_v20 }
 0x75c   : > { %2873 = vmatpush3.msra.mxu0 %v2061_v24  ;;  %2893 = vmatprep.subr.mxu1 %v3123_v21 }
 0x75d   : > { %2874 = vmatprep.subr.mxu0 %v3123_v21  ;;  %2894 = vmatpush3.msra.mxu1 %v2072_v28 }
 0x75e   : > { %2875 = vmatpush3.msra.mxu0 %v2060_v34 }
 0x75f   : > { %2876 = vmatprep.subr.mxu0 %v3123_v21 }
 0x760   : > { %2877 = vmatpush3.msra.mxu0 %v2059_v26 }
 0x761   : > { %2878 = vmatprep.subr.mxu0 %v3123_v21 }
 0x762   : > { %2879 = vmatpush3.msra.mxu0 %v2058_v3 }
 0x763   : > { %2880 = vmatprep.subr.mxu0 %v3123_v21 }
 0x764   : > { %2881 = vmatpush3.msra.mxu0 %v2057_v2 }
 0x765   : > { %2882 = vmatprep.subr.mxu0 %v3123_v21 }
 0x766   : > { %2883 = vmatpush3.msra.mxu0 %v2056_v27 }
 0x811   : > { %v2846_v29 = vpop.f32.mrf.mxu1 }
 0x812   : > { %v3799_v36 = vadd.f32 %v2846_v29, %v2500_v32 }
 0x813   : > { %v2023_v31 = vpop.f32.mrf.mxu1 }
 0x814   : > { %v3797_v4 = vadd.f32 %v2500_v32, %v2023_v31  ;;  %v2091_v47 = vmul.f32 %v3799_v36, %v3799_v36 }
 0x815   : > { %v2847_v35 = vpop.f32.mrf.mxu1 }
 0x816   : > { %v2089_v40 = vmul.f32 %v3797_v4, %v3797_v4  ;;  %v3805_v41 = vadd.f32 %v2847_v35, %v2500_v32 }
 0x817   : > { %v2026_v5 = vpop.f32.mrf.mxu1 }
 0x818   : > { %v3801_v37 = vadd.f32 %v2500_v32, %v2026_v5  ;;  %v2092_v55 = vmul.f32 %v3805_v41, %v3805_v41  ;;  %v2054_v5 = vld [vmem:[%s3878_s11 + $0x1] sm:$0x1] }
 0x819   : > { %v2850_v39 = vpop.f32.mrf.mxu1 }
 0x81a   : > { %v2076_v42 = vadd.f32 %v3801_v37, %v3797_v4  ;;  %v2090_v43 = vmul.f32 %v3801_v37, %v3801_v37  ;;  %v3819_v61 = vadd.f32 %v2850_v39, %v2500_v32 }
 0x81b   : > { %v2039_v44 = vpop.f32.mrf.mxu1 }
 0x81c   : > { %v2077_v48 = vadd.f32 %v2076_v42, %v3799_v36  ;;  %v2097_v49 = vadd.f32 %v2090_v43, %v2089_v40  ;;  %v3814_v51 = vadd.f32 %v2500_v32, %v2039_v44  ;;  %v2095_v14 = vmul.f32 %v3819_v61, %v3819_v61  ;;  %v2055_v43 = vld [vmem:[%s3878_s11 + $0x2] sm:$0x1] }
 0x81d   : > { %v2851_v54 = vpop.f32.mrf.mxu1 }
 0x81e   : > { %v2098_v56 = vadd.f32 %v2097_v49, %v2091_v47  ;;  %v2078_v57 = vadd.f32 %v2077_v48, %v3805_v41  ;;  %v2093_v8 = vmul.f32 %v3814_v51, %v3814_v51  ;;  %v3826_v12 = vadd.f32 %v2851_v54, %v2500_v32 }
 0x81f   : > { %v2042_v6 = vpop.f32.mrf.mxu1 }
 0x820   : > { %v2079_v7 = vadd.f32 %v2078_v57, %v3814_v51  ;;  %v2099_v9 = vadd.f32 %v2098_v56, %v2092_v55  ;;  %v3824_v10 = vadd.f32 %v2500_v32, %v2042_v6  ;;  %v2096_v23 = vmul.f32 %v3826_v12, %v3826_v12 }
 0x822   : > { %v2100_v11 = vadd.f32 %v2099_v9, %v2093_v8  ;;  %v2080_v13 = vadd.f32 %v2079_v7, %v3824_v10  ;;  %v2094_v30 = vmul.f32 %v3824_v10, %v3824_v10 }
 0x824   : > { %v2081_v15 = vadd.f32 %v2080_v13, %v3819_v61  ;;  %v2101_v16 = vadd.f32 %v2100_v11, %v2094_v30 }
 0x826   : > { %v2082_v22 = vadd.f32 %v2081_v15, %v3826_v12  ;;  %v2102_v25 = vadd.f32 %v2101_v16, %v2095_v14 }
 0x828   : > { %v2083_v52 = vrot.slane %v2082_v22, 4  ;;  %v2103_v38 = vadd.f32 %v2102_v25, %v2096_v23 }
 0x82a   : > { %v2084_v17 = vadd.f32 %v2083_v52, %v2082_v22  ;;  %v2104_v50 = vrot.slane %v2103_v38, 4 }
 0x82c   : > { %v2085_v18 = vrot.slane %v2084_v17, 2  ;;  %v2105_v59 = vadd.f32 %v2104_v50, %v2103_v38 }
 0x82e   : > { %v2086_v19 = vadd.f32 %v2085_v18, %v2084_v17  ;;  %v2106_v46 = vrot.slane %v2105_v59, 2 }
 0x830   : > { %v2087_v45 = vrot.slane %v2086_v19, 1  ;;  %v2107_v53 = vadd.f32 %v2106_v46, %v2105_v59 }
 0x832   : > { %v2108_v63 = vrot.slane %v2107_v53, 1  ;;  %v2088_v60 = vadd.f32 %v2087_v45, %v2086_v19 }
 0x834   : > { %v2109_v62 = vadd.f32 %v2108_v63, %v2107_v53 }
 0x836   : > { %v2110_v0 = vsel %vm735_vm2, %v2088_v60, %v2109_v62 }
 0x837   : > { %2885 = vmatmul.mubr.f32.vlgmr.msra.gmra.mxu0 %v2110_v0 }
 0x8f7   : > { %v2177_v24 = vpop.f32.mrf.mxu0 }
 0x8f8   : > { %v2181_v34 = vmul.f32 0.00390625, %v2177_v24 }
 0x8f9   : > { %v2886_v26 = vpop.f32.mrf.mxu0 }
 0x8fa   : > { %v2182_v3 = vmul.f32 %v2181_v34, %v2181_v34 }
 0x8fc   : > { %v2184_v2 = vrot.slane %v2182_v3, 7 }
 0x8fe   : > { %v2186_v27 = vsub.f32 %v2181_v34, %v2184_v2 }
 0x900   : > { %v2187_v29 = vmax.f32 %v2186_v27, 0.0 }
 0x902   : > { %v2188_v31 = vadd.f32 1e-05, %v2187_v29 }
 0x904   : > { %2991 = vrsqrt.f32 %v2188_v31 }
 0x911   : > { %v2992_v32 = vpop.eup %2991 }
 0x912   : > { %v2190_v35 = vsel %vm735_vm2, %v2181_v34, %v2992_v32 }
 0x913   : > { %2896 = vmatmul.mubr.msk.f32.vlgmr.msra.gmra.mxu1 %vm684_vm1, %v2190_v35 }
 0x9d3   : > { %v2260_v21 = vpop.f32.mrf.mxu1 }
 0x9d4   : > { %v2265_v39 = vrot.slane %v2260_v21, 1 }
 0x9d5   : > { %v2897_v40 = vpop.f32.mrf.mxu1 }
 0x9d6   : > { %v2267_v42 = vmul.f32 %v2265_v39, %v2054_v5 }
 0x9d8   : > { %v2268_v44 = vmul.f32 %v2267_v42, %v2260_v21  ;;  %v2273_v47 = vrot.slane %v2267_v42, %v3432_v58 }
 0x9da   : > { %v2269_v48 = vsub.f32 %v2055_v43, %v2268_v44  ;;  %v2274_v49 = vmul.f32 %v2273_v47, %v3797_v4  ;;  %v2275_v54 = vmul.f32 %v2273_v47, %v3801_v37  ;;  %v2276_v55 = vmul.f32 %v2273_v47, %v3799_v36 }
 0x9db   : > { %v2277_v56 = vmul.f32 %v2273_v47, %v3805_v41  ;;  %v2278_v6 = vmul.f32 %v2273_v47, %v3814_v51  ;;  %v2279_v7 = vmul.f32 %v2273_v47, %v3824_v10  ;;  %v2280_v8 = vmul.f32 %v2273_v47, %v3819_v61 }
 0x9dc   : > { %v2285_v57 = vrot.slane %v2269_v48, %v3432_v58  ;;  %v2281_v9 = vmul.f32 %v2273_v47, %v3826_v12 }
 0x9de   : > { %v2286_v11 = vadd.f32 %v2285_v57, %v2274_v49  ;;  %v2287_v13 = vadd.f32 %v2285_v57, %v2275_v54  ;;  %v2288_v30 = vadd.f32 %v2285_v57, %v2276_v55  ;;  %v2289_v4 = vadd.f32 %v2285_v57, %v2277_v56 }
 0x9df   : > { %v2290_v36 = vadd.f32 %v2285_v57, %v2278_v6  ;;  %v2291_v37 = vadd.f32 %v2285_v57, %v2279_v7  ;;  %v2292_v58 = vadd.f32 %v2285_v57, %v2280_v8  ;;  %v2293_v41 = vadd.f32 %v2285_v57, %v2281_v9 }
 0x9e0   : > { %v2294_v51 = vmax.f32 %v2286_v11, 0.0  ;;  %v2295_v14 = vmax.f32 %v2287_v13, 0.0  ;;  %v2296_v10 = vmax.f32 %v2288_v30, 0.0  ;;  %v2297_v15 = vmax.f32 %v2289_v4, 0.0 }
 0x9e1   : > { %v2298_v61 = vmax.f32 %v2290_v36, 0.0  ;;  %v2299_v16 = vmax.f32 %v2291_v37, 0.0  ;;  %v2300_v12 = vmax.f32 %v2292_v58, 0.0  ;;  %v2301_v23 = vmax.f32 %v2293_v41, 0.0 }
 0x9e2   : > { %2302 = vst [vmem:[%s526_s24] sm:$0xff] %v2294_v51  ;;  %2303 = vst [vmem:[%s526_s24 + $0x8] sm:$0xff] %v2295_v14 }
 0x9e3   : > { %2304 = vst [vmem:[%s526_s24 + $0x10] sm:$0xff] %v2296_v10  ;;  %2305 = vst [vmem:[%s526_s24 + $0x18] sm:$0xff] %v2297_v15 }
 0x9e4   : > { %2306 = vst [vmem:[%s526_s24 + $0x20] sm:$0xff] %v2298_v61  ;;  %2307 = vst [vmem:[%s526_s24 + $0x28] sm:$0xff] %v2299_v16 }
 0x9e5   : > { %2308 = vst [vmem:[%s526_s24 + $0x30] sm:$0xff] %v2300_v12  ;;  %2309 = vst [vmem:[%s526_s24 + $0x38] sm:$0xff] %v2301_v23 }
 0x9e6 PF: > { %s27_s29 = sadd.s32 1, %s3115_s29  }
 0x9e7   : > { %p24_p2 = scmp.ge.s32.totalorder %s27_s29, 4  }
 0x9e9   :  { %26 = sbr.rel (!%p24_p2) target bundleno = 3 (0x3), region = 125 }
 0x9ee   :  { %2331 = vsyncpa [#allocation3], 1 }
 0x9ef   :  { %2333 = vsyncpa [#allocation3 + $0x1], 1 }
 0x9f0   :  { %2334 = vsyncpa [#allocation5], 1 }
 0x9f1   :  { %2335 = vsyncpa [#allocation8], 1 }

</bundles_post_ra>
